<compile_context>
chip_gen: v6e
topology: v6e:2x2x1
jax: 0.10.0
libtpu: 0.0.40
codegen_flags: <defaults>
</compile_context>

<pallas_src>
import jax
import jax.numpy as jnp
from jax.experimental import pallas as pl
from jax.experimental.pallas import tpu as pltpu  # noqa: F401

# ---------------- model config (small, synthetic CLIP-ViT) ----------------
BATCH = 2
IN_CH = 3
IMG = 16
PATCH = 8
GRID_HW = IMG // PATCH                    # 2
NUM_PATCHES = GRID_HW * GRID_HW           # 4
SEQ = NUM_PATCHES + 1                     # 5 (CLS + patches)
BS = BATCH * SEQ                          # 10 rows in the activation slab
PATCH_DIM = IN_CH * PATCH * PATCH         # 192
HIDDEN = 32
NUM_HEADS = 4
HEAD_DIM = HIDDEN // NUM_HEADS            # 8
MLP = 4 * HIDDEN                          # 128
NUM_LAYERS = 2
LN_EPS = 1e-5
ATTN_SCALE = HEAD_DIM ** -0.5
NEG_BIG = -1e30

# ---------------- packed-operand layouts ----------------
# "narrow" weight slab (lanes = HIDDEN, bf16): per layer 256 rows, then patch_w
OFF_WQ, OFF_WK, OFF_WV, OFF_WO, OFF_W2 = 0, 32, 64, 96, 128
LAYER_NARROW_ROWS = 4 * HIDDEN + MLP      # 256
ROW_PATCHW = NUM_LAYERS * LAYER_NARROW_ROWS          # 512
W_NARROW_ROWS = ROW_PATCHW + PATCH_DIM                # 704

# f32 vector slab (lanes = MLP = 128)
ROW_POS = 0                               # BS rows: position (+folded CLS) embeds
ROW_BIAS = 16                             # BS rows: block-diagonal attention bias
ROW_PRE_G, ROW_PRE_B = 26, 27
ROW_POST_G, ROW_POST_B = 28, 29
ROW_HEADMASK = 32                         # NUM_HEADS rows: per-head lane masks
ROW_LAYER = 40                            # per-layer vectors start here
VEC_ROWS_PER_LAYER = 10                   # ln1_g,ln1_b,bq,bk,bv,bo,ln2_g,ln2_b,b1,b2
VEC_ROWS = 64
VEC_LANES = MLP


def _layernorm(v, g, b):
    # variance as E[x^2] - E[x]^2: the two lane reductions are independent.
    mu = jnp.mean(v, axis=-1, keepdims=True)
    ms = jnp.mean(v * v, axis=-1, keepdims=True)
    var = ms - mu * mu
    return (v - mu) * jax.lax.rsqrt(var + LN_EPS) * g + b


def clip_vision_kernel(patches_ref, w_narrow_ref, w_wide_ref, vecs_ref, out_ref):
    f32 = jnp.float32
    bf16 = jnp.bfloat16

    def vrow(r, width=HIDDEN):
        return vecs_ref[r:r + 1, 0:width]                     # (1, width) f32

    # ---- constants (loaded once; all slices lane-0 / 8-aligned sublane) ----
    pre_g, pre_b = vrow(ROW_PRE_G), vrow(ROW_PRE_B)
    post_g, post_b = vrow(ROW_POST_G), vrow(ROW_POST_B)
    pos = vecs_ref[ROW_POS:ROW_POS + BS, 0:HIDDEN]            # (BS, H)
    attn_bias = vecs_ref[ROW_BIAS:ROW_BIAS + BS, 0:BS]        # (BS, BS)
    head_masks = [vrow(ROW_HEADMASK + h) for h in range(NUM_HEADS)]

    # ---- patch embedding (im2col matmul) + folded CLS/pos + pre-LN ----
    patch_w = w_narrow_ref[ROW_PATCHW:ROW_PATCHW + PATCH_DIM, :]   # (PATCH_DIM, H) bf16
    x = jnp.dot(patches_ref[...].astype(bf16), patch_w,
                preferred_element_type=f32)                   # (BS, H)
    x = x + pos
    x = _layernorm(x, pre_g, pre_b)

    # ---- transformer encoder layers ----
    for l in range(NUM_LAYERS):
        wb = l * LAYER_NARROW_ROWS
        vb = ROW_LAYER + l * VEC_ROWS_PER_LAYER
        wq = w_narrow_ref[wb + OFF_WQ:wb + OFF_WQ + HIDDEN, :]     # q already scaled
        wk = w_narrow_ref[wb + OFF_WK:wb + OFF_WK + HIDDEN, :]
        wv = w_narrow_ref[wb + OFF_WV:wb + OFF_WV + HIDDEN, :]
        wo = w_narrow_ref[wb + OFF_WO:wb + OFF_WO + HIDDEN, :]
        w2 = w_narrow_ref[wb + OFF_W2:wb + OFF_W2 + MLP, :]
        w1 = w_wide_ref[l * HIDDEN:(l + 1) * HIDDEN, :]

        # --- self attention ---
        residual = x
        h = _layernorm(x, vrow(vb + 0), vrow(vb + 1))
        hb = h.astype(bf16)
        q = jnp.dot(hb, wq, preferred_element_type=f32) + vrow(vb + 2)
        k = jnp.dot(hb, wk, preferred_element_type=f32) + vrow(vb + 3)
        v = jnp.dot(hb, wv, preferred_element_type=f32) + vrow(vb + 4)
        kT = k.T                                              # one XLU transpose / layer

        attn = jnp.zeros((BS, HIDDEN), f32)
        for mh in head_masks:
            # (q ⊙ m_h) @ k^T contracts only head-h lanes -> per-head scores
            s = jnp.dot(q * mh, kT, preferred_element_type=f32)    # (BS, BS)
            s = s + attn_bias
            s = s - jnp.max(s, axis=-1, keepdims=True)
            p = jnp.exp(s)
            p = p * pl.reciprocal(jnp.sum(p, axis=-1, keepdims=True), approx=True)
            # p @ (v ⊙ m_h) only fills head-h lanes; summing heads == concat
            attn = attn + jnp.dot(p, v * mh, preferred_element_type=f32)

        attn = jnp.dot(attn.astype(bf16), wo,
                       preferred_element_type=f32) + vrow(vb + 5)
        x = residual + attn

        # --- MLP block (quick_gelu, as in CLIP) ---
        residual = x
        h = _layernorm(x, vrow(vb + 6), vrow(vb + 7))
        h = jnp.dot(h.astype(bf16), w1,
                    preferred_element_type=f32) + vrow(vb + 8, width=MLP)
        h = h * jax.nn.sigmoid(1.702 * h)
        h = jnp.dot(h.astype(bf16), w2,
                    preferred_element_type=f32) + vrow(vb + 9)
        x = residual + h

    # ---- pooler: post layernorm of CLS rows (rows [0, B) -> one dense store) ----
    out_ref[...] = _layernorm(x[0:BATCH, :], post_g, post_b)


def init_params(key):
    """Deterministic synthetic CLIP-style parameters with all offline folds:
       - CLS token embedding folded into each image's pos row 0
       - attention scale folded into the q projection
       - weights packed into two bf16 slabs; all biases/LN/pos/bias-mask
         constants packed into one f32 slab."""
    ks = jax.random.split(key, 10)
    scale = 0.02
    patch_w = scale * jax.random.normal(ks[0], (PATCH_DIM, HIDDEN), jnp.float32)
    cls = scale * jax.random.normal(ks[1], (1, HIDDEN), jnp.float32)
    pos = scale * jax.random.normal(ks[2], (SEQ, HIDDEN), jnp.float32)

    wq = scale * jax.random.normal(ks[3], (NUM_LAYERS, HIDDEN, HIDDEN), jnp.float32)
    wk = scale * jax.random.normal(ks[4], (NUM_LAYERS, HIDDEN, HIDDEN), jnp.float32)
    wv = scale * jax.random.normal(ks[5], (NUM_LAYERS, HIDDEN, HIDDEN), jnp.float32)
    wo = scale * jax.random.normal(ks[6], (NUM_LAYERS, HIDDEN, HIDDEN), jnp.float32)
    w1 = scale * jax.random.normal(ks[7], (NUM_LAYERS, HIDDEN, MLP), jnp.float32)
    w2 = scale * jax.random.normal(ks[8], (NUM_LAYERS, MLP, HIDDEN), jnp.float32)
    # all linear biases zero, LN gamma=1 / beta=0 (synthetic frozen model)

    # ---- narrow weight slab (wq*scale, wk, wv, wo, w2 per layer, then patch_w) ----
    blocks = []
    for l in range(NUM_LAYERS):
        blocks += [wq[l] * ATTN_SCALE, wk[l], wv[l], wo[l], w2[l]]
    blocks.append(patch_w)
    w_narrow = jnp.concatenate(blocks, axis=0).astype(jnp.bfloat16)
    assert w_narrow.shape == (W_NARROW_ROWS, HIDDEN)

    # ---- wide weight slab (w1 per layer) ----
    w_wide = w1.reshape(NUM_LAYERS * HIDDEN, MLP).astype(jnp.bfloat16)

    # ---- f32 vector/constant slab ----
    vecs = jnp.zeros((VEC_ROWS, VEC_LANES), jnp.float32)
    # pos embeds, CLS-rows-first order (rows [0,B) = cls+pos0, then patches)
    pos_cls_row = pos[0:1] + cls
    pos_rows = jnp.concatenate(
        [jnp.tile(pos_cls_row, (BATCH, 1)), jnp.tile(pos[1:], (BATCH, 1))], axis=0)
    vecs = vecs.at[ROW_POS:ROW_POS + BS, 0:HIDDEN].set(pos_rows)
    # block-diagonal (per-image) additive attention bias for CLS-first row order
    img_id = jnp.concatenate(
        [jnp.arange(BATCH), jnp.repeat(jnp.arange(BATCH), NUM_PATCHES)])
    bias = jnp.where(img_id[:, None] == img_id[None, :], 0.0, NEG_BIG).astype(jnp.float32)
    vecs = vecs.at[ROW_BIAS:ROW_BIAS + BS, 0:BS].set(bias)
    # pre / post layernorm params
    vecs = vecs.at[ROW_PRE_G, 0:HIDDEN].set(1.0)
    vecs = vecs.at[ROW_POST_G, 0:HIDDEN].set(1.0)
    # per-head lane masks
    lane = jnp.arange(HIDDEN)
    for h in range(NUM_HEADS):
        vecs = vecs.at[ROW_HEADMASK + h, 0:HIDDEN].set(
            (lane // HEAD_DIM == h).astype(jnp.float32))
    # per-layer LN gammas (betas & linear biases stay zero)
    for l in range(NUM_LAYERS):
        vb = ROW_LAYER + l * VEC_ROWS_PER_LAYER
        vecs = vecs.at[vb + 0, 0:HIDDEN].set(1.0)   # ln1_g
        vecs = vecs.at[vb + 6, 0:HIDDEN].set(1.0)   # ln2_g

    return {
        "w_narrow": w_narrow,
        "w_wide": w_wide,
        "vecs": vecs,
        "zero_cls_rows": jnp.zeros((BATCH, PATCH_DIM), jnp.float32),
    }
    # TODO(synk): real pretrained CLIP-ViT-B/32 weights are not loaded (synthetic init only).


@jax.jit
def reference_encoder_forward(pixel_values, params):
    """pixel_values: (B, C, H, W) float32 (NCHW like the PyTorch module).
    Returns pooled_output: (B, HIDDEN).  Whole batch runs in ONE kernel call."""
    B, C, Hh, Ww = pixel_values.shape
    assert B == BATCH and C == IN_CH and Hh == IMG and Ww == IMG
    gh, gw = Hh // PATCH, Ww // PATCH
    # im2col for the stride=PATCH patch-embedding conv (layout glue, plain JAX):
    patches = pixel_values.reshape(B, C, gh, PATCH, gw, PATCH)
    patches = patches.transpose(0, 2, 4, 1, 3, 5).reshape(B * gh * gw, C * PATCH * PATCH)
    # CLS rows first (their content lives entirely in the pos slab)
    patches = jnp.concatenate([params["zero_cls_rows"], patches], axis=0)  # (BS, PATCH_DIM)

    return pl.pallas_call(
        clip_vision_kernel,
        out_shape=jax.ShapeDtypeStruct((B, HIDDEN), jnp.float32),
    )(patches, params["w_narrow"], params["w_wide"], params["vecs"])


if __name__ == "__main__":
    key = jax.random.PRNGKey(0)
    k_img, k_par = jax.random.split(key)
    pixel_values = jax.random.normal(k_img, (BATCH, IN_CH, IMG, IMG), jnp.float32)
    params = init_params(k_par)

    pooled = reference_encoder_forward(pixel_values, params)
    pooled = jax.block_until_ready(pooled)
    assert pooled.shape == (BATCH, HIDDEN), pooled.shape
    assert bool(jnp.all(jnp.isfinite(pooled)))
    print("KERNEL_OK")
</pallas_src>

<mosaic_0001>
module attributes {stable_mosaic.version = 11 : i64} {
  func.func @clip_vision_kernel(%arg0: memref<10x192xf32, #tpu.memory_space<vmem>>, %arg1: memref<704x32xbf16, #tpu.memory_space<vmem>>, %arg2: memref<64x128xbf16, #tpu.memory_space<vmem>>, %arg3: memref<64x128xf32, #tpu.memory_space<vmem>>, %arg4: memref<2x32xf32, #tpu.memory_space<vmem>>) attributes {dimension_semantics = [], scalar_prefetch = 0 : i64, scratch_operands = 0 : i64, tpu.core_type = #tpu.core_type<tc>} {
    %c26 = arith.constant 26 : index
    %c0 = arith.constant 0 : index
    %0 = vector.load %arg3[%c26, %c0] : memref<64x128xf32, #tpu.memory_space<vmem>>, vector<1x32xf32>
    %c27 = arith.constant 27 : index
    %c0_0 = arith.constant 0 : index
    %1 = vector.load %arg3[%c27, %c0_0] : memref<64x128xf32, #tpu.memory_space<vmem>>, vector<1x32xf32>
    %c28 = arith.constant 28 : index
    %c0_1 = arith.constant 0 : index
    %2 = vector.load %arg3[%c28, %c0_1] : memref<64x128xf32, #tpu.memory_space<vmem>>, vector<1x32xf32>
    %c29 = arith.constant 29 : index
    %c0_2 = arith.constant 0 : index
    %3 = vector.load %arg3[%c29, %c0_2] : memref<64x128xf32, #tpu.memory_space<vmem>>, vector<1x32xf32>
    %c0_3 = arith.constant 0 : index
    %c0_4 = arith.constant 0 : index
    %4 = vector.load %arg3[%c0_3, %c0_4] : memref<64x128xf32, #tpu.memory_space<vmem>>, vector<10x32xf32>
    %c16 = arith.constant 16 : index
    %c0_5 = arith.constant 0 : index
    %5 = vector.load %arg3[%c16, %c0_5] : memref<64x128xf32, #tpu.memory_space<vmem>>, vector<10x10xf32>
    %c32 = arith.constant 32 : index
    %c0_6 = arith.constant 0 : index
    %6 = vector.load %arg3[%c32, %c0_6] : memref<64x128xf32, #tpu.memory_space<vmem>>, vector<1x32xf32>
    %c33 = arith.constant 33 : index
    %c0_7 = arith.constant 0 : index
    %7 = vector.load %arg3[%c33, %c0_7] : memref<64x128xf32, #tpu.memory_space<vmem>>, vector<1x32xf32>
    %c34 = arith.constant 34 : index
    %c0_8 = arith.constant 0 : index
    %8 = vector.load %arg3[%c34, %c0_8] : memref<64x128xf32, #tpu.memory_space<vmem>>, vector<1x32xf32>
    %c35 = arith.constant 35 : index
    %c0_9 = arith.constant 0 : index
    %9 = vector.load %arg3[%c35, %c0_9] : memref<64x128xf32, #tpu.memory_space<vmem>>, vector<1x32xf32>
    %c512 = arith.constant 512 : index
    %c0_10 = arith.constant 0 : index
    %10 = vector.load %arg1[%c512, %c0_10] : memref<704x32xbf16, #tpu.memory_space<vmem>>, vector<192x32xbf16>
    %c0_11 = arith.constant 0 : index
    %c0_12 = arith.constant 0 : index
    %11 = vector.load %arg0[%c0_11, %c0_12] : memref<10x192xf32, #tpu.memory_space<vmem>>, vector<10x192xf32>
    %12 = arith.truncf %11 : vector<10x192xf32> to vector<10x192xbf16>
    %cst = arith.constant dense<0.000000e+00> : vector<10x32xf32>
    %13 = tpu.matmul %12, %10, %cst {dimension_numbers = #tpu.dot_dimension_numbers<[1], [0], [0], [1], [0, 0, 1, 1], [], []>} : vector<10x192xbf16>, vector<192x32xbf16>, vector<10x32xf32> -> vector<10x32xf32>
    %14 = arith.addf %13, %4 : vector<10x32xf32>
    %cst_13 = arith.constant dense<0.000000e+00> : vector<10xf32>
    %15 = vector.multi_reduction <add>, %14, %cst_13 [1] : vector<10x32xf32> to vector<10xf32>
    %16 = vector.shape_cast %15 : vector<10xf32> to vector<10x1xf32>
    %cst_14 = arith.constant 3.200000e+01 : f32
    %17 = vector.broadcast %cst_14 : f32 to vector<10x1xf32>
    %18 = arith.divf %16, %17 : vector<10x1xf32>
    %19 = arith.mulf %14, %14 : vector<10x32xf32>
    %cst_15 = arith.constant dense<0.000000e+00> : vector<10xf32>
    %20 = vector.multi_reduction <add>, %19, %cst_15 [1] : vector<10x32xf32> to vector<10xf32>
    %21 = vector.shape_cast %20 : vector<10xf32> to vector<10x1xf32>
    %cst_16 = arith.constant 3.200000e+01 : f32
    %22 = vector.broadcast %cst_16 : f32 to vector<10x1xf32>
    %23 = arith.divf %21, %22 : vector<10x1xf32>
    %24 = arith.mulf %18, %18 : vector<10x1xf32>
    %25 = arith.subf %23, %24 : vector<10x1xf32>
    %26 = vector.broadcast %18 : vector<10x1xf32> to vector<10x32xf32>
    %27 = arith.subf %14, %26 : vector<10x32xf32>
    %cst_17 = arith.constant 9.99999974E-6 : f32
    %28 = vector.broadcast %cst_17 : f32 to vector<10x1xf32>
    %29 = arith.addf %25, %28 : vector<10x1xf32>
    %30 = math.rsqrt %29 : vector<10x1xf32>
    %31 = vector.broadcast %30 : vector<10x1xf32> to vector<10x32xf32>
    %32 = arith.mulf %27, %31 : vector<10x32xf32>
    %33 = vector.broadcast %0 : vector<1x32xf32> to vector<10x32xf32>
    %34 = arith.mulf %32, %33 : vector<10x32xf32>
    %35 = vector.broadcast %1 : vector<1x32xf32> to vector<10x32xf32>
    %36 = arith.addf %34, %35 : vector<10x32xf32>
    %c0_18 = arith.constant 0 : index
    %c0_19 = arith.constant 0 : index
    %37 = vector.load %arg1[%c0_18, %c0_19] : memref<704x32xbf16, #tpu.memory_space<vmem>>, vector<32x32xbf16>
    %c32_20 = arith.constant 32 : index
    %c0_21 = arith.constant 0 : index
    %38 = vector.load %arg1[%c32_20, %c0_21] : memref<704x32xbf16, #tpu.memory_space<vmem>>, vector<32x32xbf16>
    %c64 = arith.constant 64 : index
    %c0_22 = arith.constant 0 : index
    %39 = vector.load %arg1[%c64, %c0_22] : memref<704x32xbf16, #tpu.memory_space<vmem>>, vector<32x32xbf16>
    %c96 = arith.constant 96 : index
    %c0_23 = arith.constant 0 : index
    %40 = vector.load %arg1[%c96, %c0_23] : memref<704x32xbf16, #tpu.memory_space<vmem>>, vector<32x32xbf16>
    %c128 = arith.constant 128 : index
    %c0_24 = arith.constant 0 : index
    %41 = vector.load %arg1[%c128, %c0_24] : memref<704x32xbf16, #tpu.memory_space<vmem>>, vector<128x32xbf16>
    %c0_25 = arith.constant 0 : index
    %c0_26 = arith.constant 0 : index
    %42 = vector.load %arg2[%c0_25, %c0_26] : memref<64x128xbf16, #tpu.memory_space<vmem>>, vector<32x128xbf16>
    %c40 = arith.constant 40 : index
    %c0_27 = arith.constant 0 : index
    %43 = vector.load %arg3[%c40, %c0_27] : memref<64x128xf32, #tpu.memory_space<vmem>>, vector<1x32xf32>
    %c41 = arith.constant 41 : index
    %c0_28 = arith.constant 0 : index
    %44 = vector.load %arg3[%c41, %c0_28] : memref<64x128xf32, #tpu.memory_space<vmem>>, vector<1x32xf32>
    %cst_29 = arith.constant dense<0.000000e+00> : vector<10xf32>
    %45 = vector.multi_reduction <add>, %36, %cst_29 [1] : vector<10x32xf32> to vector<10xf32>
    %46 = vector.shape_cast %45 : vector<10xf32> to vector<10x1xf32>
    %cst_30 = arith.constant 3.200000e+01 : f32
    %47 = vector.broadcast %cst_30 : f32 to vector<10x1xf32>
    %48 = arith.divf %46, %47 : vector<10x1xf32>
    %49 = arith.mulf %36, %36 : vector<10x32xf32>
    %cst_31 = arith.constant dense<0.000000e+00> : vector<10xf32>
    %50 = vector.multi_reduction <add>, %49, %cst_31 [1] : vector<10x32xf32> to vector<10xf32>
    %51 = vector.shape_cast %50 : vector<10xf32> to vector<10x1xf32>
    %cst_32 = arith.constant 3.200000e+01 : f32
    %52 = vector.broadcast %cst_32 : f32 to vector<10x1xf32>
    %53 = arith.divf %51, %52 : vector<10x1xf32>
    %54 = arith.mulf %48, %48 : vector<10x1xf32>
    %55 = arith.subf %53, %54 : vector<10x1xf32>
    %56 = vector.broadcast %48 : vector<10x1xf32> to vector<10x32xf32>
    %57 = arith.subf %36, %56 : vector<10x32xf32>
    %cst_33 = arith.constant 9.99999974E-6 : f32
    %58 = vector.broadcast %cst_33 : f32 to vector<10x1xf32>
    %59 = arith.addf %55, %58 : vector<10x1xf32>
    %60 = math.rsqrt %59 : vector<10x1xf32>
    %61 = vector.broadcast %60 : vector<10x1xf32> to vector<10x32xf32>
    %62 = arith.mulf %57, %61 : vector<10x32xf32>
    %63 = vector.broadcast %43 : vector<1x32xf32> to vector<10x32xf32>
    %64 = arith.mulf %62, %63 : vector<10x32xf32>
    %65 = vector.broadcast %44 : vector<1x32xf32> to vector<10x32xf32>
    %66 = arith.addf %64, %65 : vector<10x32xf32>
    %67 = arith.truncf %66 : vector<10x32xf32> to vector<10x32xbf16>
    %cst_34 = arith.constant dense<0.000000e+00> : vector<10x32xf32>
    %68 = tpu.matmul %67, %37, %cst_34 {dimension_numbers = #tpu.dot_dimension_numbers<[1], [0], [0], [1], [0, 0, 1, 1], [], []>} : vector<10x32xbf16>, vector<32x32xbf16>, vector<10x32xf32> -> vector<10x32xf32>
    %c42 = arith.constant 42 : index
    %c0_35 = arith.constant 0 : index
    %69 = vector.load %arg3[%c42, %c0_35] : memref<64x128xf32, #tpu.memory_space<vmem>>, vector<1x32xf32>
    %70 = vector.broadcast %69 : vector<1x32xf32> to vector<10x32xf32>
    %71 = arith.addf %68, %70 : vector<10x32xf32>
    %cst_36 = arith.constant dense<0.000000e+00> : vector<10x32xf32>
    %72 = tpu.matmul %67, %38, %cst_36 {dimension_numbers = #tpu.dot_dimension_numbers<[1], [0], [0], [1], [0, 0, 1, 1], [], []>} : vector<10x32xbf16>, vector<32x32xbf16>, vector<10x32xf32> -> vector<10x32xf32>
    %c43 = arith.constant 43 : index
    %c0_37 = arith.constant 0 : index
    %73 = vector.load %arg3[%c43, %c0_37] : memref<64x128xf32, #tpu.memory_space<vmem>>, vector<1x32xf32>
    %74 = vector.broadcast %73 : vector<1x32xf32> to vector<10x32xf32>
    %75 = arith.addf %72, %74 : vector<10x32xf32>
    %cst_38 = arith.constant dense<0.000000e+00> : vector<10x32xf32>
    %76 = tpu.matmul %67, %39, %cst_38 {dimension_numbers = #tpu.dot_dimension_numbers<[1], [0], [0], [1], [0, 0, 1, 1], [], []>} : vector<10x32xbf16>, vector<32x32xbf16>, vector<10x32xf32> -> vector<10x32xf32>
    %c44 = arith.constant 44 : index
    %c0_39 = arith.constant 0 : index
    %77 = vector.load %arg3[%c44, %c0_39] : memref<64x128xf32, #tpu.memory_space<vmem>>, vector<1x32xf32>
    %78 = vector.broadcast %77 : vector<1x32xf32> to vector<10x32xf32>
    %79 = arith.addf %76, %78 : vector<10x32xf32>
    %80 = tpu.transpose %75, [1, 0] : vector<10x32xf32> -> vector<32x10xf32>
    %cst_40 = arith.constant 0.000000e+00 : f32
    %81 = vector.broadcast %cst_40 : f32 to vector<10x32xf32>
    %82 = vector.broadcast %6 : vector<1x32xf32> to vector<10x32xf32>
    %83 = arith.mulf %71, %82 : vector<10x32xf32>
    %cst_41 = arith.constant dense<0.000000e+00> : vector<10x10xf32>
    %84 = tpu.matmul %83, %80, %cst_41 {dimension_numbers = #tpu.dot_dimension_numbers<[1], [0], [0], [1], [0, 0, 1, 1], [], []>} : vector<10x32xf32>, vector<32x10xf32>, vector<10x10xf32> -> vector<10x10xf32>
    %85 = arith.addf %84, %5 : vector<10x10xf32>
    %cst_42 = arith.constant dense<0xFF800000> : vector<10xf32>
    %86 = vector.multi_reduction <maximumf>, %85, %cst_42 [1] : vector<10x10xf32> to vector<10xf32>
    %87 = vector.shape_cast %86 : vector<10xf32> to vector<10x1xf32>
    %88 = vector.broadcast %87 : vector<10x1xf32> to vector<10x10xf32>
    %89 = arith.subf %85, %88 : vector<10x10xf32>
    %90 = math.exp %89 : vector<10x10xf32>
    %cst_43 = arith.constant dense<0.000000e+00> : vector<10xf32>
    %91 = vector.multi_reduction <add>, %90, %cst_43 [1] : vector<10x10xf32> to vector<10xf32>
    %92 = vector.shape_cast %91 : vector<10xf32> to vector<10x1xf32>
    %93 = tpu.reciprocal %92 {approx = true} : vector<10x1xf32> -> vector<10x1xf32>
    %94 = vector.broadcast %93 : vector<10x1xf32> to vector<10x10xf32>
    %95 = arith.mulf %90, %94 : vector<10x10xf32>
    %96 = vector.broadcast %6 : vector<1x32xf32> to vector<10x32xf32>
    %97 = arith.mulf %79, %96 : vector<10x32xf32>
    %cst_44 = arith.constant dense<0.000000e+00> : vector<10x32xf32>
    %98 = tpu.matmul %95, %97, %cst_44 {dimension_numbers = #tpu.dot_dimension_numbers<[1], [0], [0], [1], [0, 0, 1, 1], [], []>} : vector<10x10xf32>, vector<10x32xf32>, vector<10x32xf32> -> vector<10x32xf32>
    %99 = arith.addf %81, %98 : vector<10x32xf32>
    %100 = vector.broadcast %7 : vector<1x32xf32> to vector<10x32xf32>
    %101 = arith.mulf %71, %100 : vector<10x32xf32>
    %cst_45 = arith.constant dense<0.000000e+00> : vector<10x10xf32>
    %102 = tpu.matmul %101, %80, %cst_45 {dimension_numbers = #tpu.dot_dimension_numbers<[1], [0], [0], [1], [0, 0, 1, 1], [], []>} : vector<10x32xf32>, vector<32x10xf32>, vector<10x10xf32> -> vector<10x10xf32>
    %103 = arith.addf %102, %5 : vector<10x10xf32>
    %cst_46 = arith.constant dense<0xFF800000> : vector<10xf32>
    %104 = vector.multi_reduction <maximumf>, %103, %cst_46 [1] : vector<10x10xf32> to vector<10xf32>
    %105 = vector.shape_cast %104 : vector<10xf32> to vector<10x1xf32>
    %106 = vector.broadcast %105 : vector<10x1xf32> to vector<10x10xf32>
    %107 = arith.subf %103, %106 : vector<10x10xf32>
    %108 = math.exp %107 : vector<10x10xf32>
    %cst_47 = arith.constant dense<0.000000e+00> : vector<10xf32>
    %109 = vector.multi_reduction <add>, %108, %cst_47 [1] : vector<10x10xf32> to vector<10xf32>
    %110 = vector.shape_cast %109 : vector<10xf32> to vector<10x1xf32>
    %111 = tpu.reciprocal %110 {approx = true} : vector<10x1xf32> -> vector<10x1xf32>
    %112 = vector.broadcast %111 : vector<10x1xf32> to vector<10x10xf32>
    %113 = arith.mulf %108, %112 : vector<10x10xf32>
    %114 = vector.broadcast %7 : vector<1x32xf32> to vector<10x32xf32>
    %115 = arith.mulf %79, %114 : vector<10x32xf32>
    %cst_48 = arith.constant dense<0.000000e+00> : vector<10x32xf32>
    %116 = tpu.matmul %113, %115, %cst_48 {dimension_numbers = #tpu.dot_dimension_numbers<[1], [0], [0], [1], [0, 0, 1, 1], [], []>} : vector<10x10xf32>, vector<10x32xf32>, vector<10x32xf32> -> vector<10x32xf32>
    %117 = arith.addf %99, %116 : vector<10x32xf32>
    %118 = vector.broadcast %8 : vector<1x32xf32> to vector<10x32xf32>
    %119 = arith.mulf %71, %118 : vector<10x32xf32>
    %cst_49 = arith.constant dense<0.000000e+00> : vector<10x10xf32>
    %120 = tpu.matmul %119, %80, %cst_49 {dimension_numbers = #tpu.dot_dimension_numbers<[1], [0], [0], [1], [0, 0, 1, 1], [], []>} : vector<10x32xf32>, vector<32x10xf32>, vector<10x10xf32> -> vector<10x10xf32>
    %121 = arith.addf %120, %5 : vector<10x10xf32>
    %cst_50 = arith.constant dense<0xFF800000> : vector<10xf32>
    %122 = vector.multi_reduction <maximumf>, %121, %cst_50 [1] : vector<10x10xf32> to vector<10xf32>
    %123 = vector.shape_cast %122 : vector<10xf32> to vector<10x1xf32>
    %124 = vector.broadcast %123 : vector<10x1xf32> to vector<10x10xf32>
    %125 = arith.subf %121, %124 : vector<10x10xf32>
    %126 = math.exp %125 : vector<10x10xf32>
    %cst_51 = arith.constant dense<0.000000e+00> : vector<10xf32>
    %127 = vector.multi_reduction <add>, %126, %cst_51 [1] : vector<10x10xf32> to vector<10xf32>
    %128 = vector.shape_cast %127 : vector<10xf32> to vector<10x1xf32>
    %129 = tpu.reciprocal %128 {approx = true} : vector<10x1xf32> -> vector<10x1xf32>
    %130 = vector.broadcast %129 : vector<10x1xf32> to vector<10x10xf32>
    %131 = arith.mulf %126, %130 : vector<10x10xf32>
    %132 = vector.broadcast %8 : vector<1x32xf32> to vector<10x32xf32>
    %133 = arith.mulf %79, %132 : vector<10x32xf32>
    %cst_52 = arith.constant dense<0.000000e+00> : vector<10x32xf32>
    %134 = tpu.matmul %131, %133, %cst_52 {dimension_numbers = #tpu.dot_dimension_numbers<[1], [0], [0], [1], [0, 0, 1, 1], [], []>} : vector<10x10xf32>, vector<10x32xf32>, vector<10x32xf32> -> vector<10x32xf32>
    %135 = arith.addf %117, %134 : vector<10x32xf32>
    %136 = vector.broadcast %9 : vector<1x32xf32> to vector<10x32xf32>
    %137 = arith.mulf %71, %136 : vector<10x32xf32>
    %cst_53 = arith.constant dense<0.000000e+00> : vector<10x10xf32>
    %138 = tpu.matmul %137, %80, %cst_53 {dimension_numbers = #tpu.dot_dimension_numbers<[1], [0], [0], [1], [0, 0, 1, 1], [], []>} : vector<10x32xf32>, vector<32x10xf32>, vector<10x10xf32> -> vector<10x10xf32>
    %139 = arith.addf %138, %5 : vector<10x10xf32>
    %cst_54 = arith.constant dense<0xFF800000> : vector<10xf32>
    %140 = vector.multi_reduction <maximumf>, %139, %cst_54 [1] : vector<10x10xf32> to vector<10xf32>
    %141 = vector.shape_cast %140 : vector<10xf32> to vector<10x1xf32>
    %142 = vector.broadcast %141 : vector<10x1xf32> to vector<10x10xf32>
    %143 = arith.subf %139, %142 : vector<10x10xf32>
    %144 = math.exp %143 : vector<10x10xf32>
    %cst_55 = arith.constant dense<0.000000e+00> : vector<10xf32>
    %145 = vector.multi_reduction <add>, %144, %cst_55 [1] : vector<10x10xf32> to vector<10xf32>
    %146 = vector.shape_cast %145 : vector<10xf32> to vector<10x1xf32>
    %147 = tpu.reciprocal %146 {approx = true} : vector<10x1xf32> -> vector<10x1xf32>
    %148 = vector.broadcast %147 : vector<10x1xf32> to vector<10x10xf32>
    %149 = arith.mulf %144, %148 : vector<10x10xf32>
    %150 = vector.broadcast %9 : vector<1x32xf32> to vector<10x32xf32>
    %151 = arith.mulf %79, %150 : vector<10x32xf32>
    %cst_56 = arith.constant dense<0.000000e+00> : vector<10x32xf32>
    %152 = tpu.matmul %149, %151, %cst_56 {dimension_numbers = #tpu.dot_dimension_numbers<[1], [0], [0], [1], [0, 0, 1, 1], [], []>} : vector<10x10xf32>, vector<10x32xf32>, vector<10x32xf32> -> vector<10x32xf32>
    %153 = arith.addf %135, %152 : vector<10x32xf32>
    %154 = arith.truncf %153 : vector<10x32xf32> to vector<10x32xbf16>
    %cst_57 = arith.constant dense<0.000000e+00> : vector<10x32xf32>
    %155 = tpu.matmul %154, %40, %cst_57 {dimension_numbers = #tpu.dot_dimension_numbers<[1], [0], [0], [1], [0, 0, 1, 1], [], []>} : vector<10x32xbf16>, vector<32x32xbf16>, vector<10x32xf32> -> vector<10x32xf32>
    %c45 = arith.constant 45 : index
    %c0_58 = arith.constant 0 : index
    %156 = vector.load %arg3[%c45, %c0_58] : memref<64x128xf32, #tpu.memory_space<vmem>>, vector<1x32xf32>
    %157 = vector.broadcast %156 : vector<1x32xf32> to vector<10x32xf32>
    %158 = arith.addf %155, %157 : vector<10x32xf32>
    %159 = arith.addf %36, %158 : vector<10x32xf32>
    %c46 = arith.constant 46 : index
    %c0_59 = arith.constant 0 : index
    %160 = vector.load %arg3[%c46, %c0_59] : memref<64x128xf32, #tpu.memory_space<vmem>>, vector<1x32xf32>
    %c47 = arith.constant 47 : index
    %c0_60 = arith.constant 0 : index
    %161 = vector.load %arg3[%c47, %c0_60] : memref<64x128xf32, #tpu.memory_space<vmem>>, vector<1x32xf32>
    %cst_61 = arith.constant dense<0.000000e+00> : vector<10xf32>
    %162 = vector.multi_reduction <add>, %159, %cst_61 [1] : vector<10x32xf32> to vector<10xf32>
    %163 = vector.shape_cast %162 : vector<10xf32> to vector<10x1xf32>
    %cst_62 = arith.constant 3.200000e+01 : f32
    %164 = vector.broadcast %cst_62 : f32 to vector<10x1xf32>
    %165 = arith.divf %163, %164 : vector<10x1xf32>
    %166 = arith.mulf %159, %159 : vector<10x32xf32>
    %cst_63 = arith.constant dense<0.000000e+00> : vector<10xf32>
    %167 = vector.multi_reduction <add>, %166, %cst_63 [1] : vector<10x32xf32> to vector<10xf32>
    %168 = vector.shape_cast %167 : vector<10xf32> to vector<10x1xf32>
    %cst_64 = arith.constant 3.200000e+01 : f32
    %169 = vector.broadcast %cst_64 : f32 to vector<10x1xf32>
    %170 = arith.divf %168, %169 : vector<10x1xf32>
    %171 = arith.mulf %165, %165 : vector<10x1xf32>
    %172 = arith.subf %170, %171 : vector<10x1xf32>
    %173 = vector.broadcast %165 : vector<10x1xf32> to vector<10x32xf32>
    %174 = arith.subf %159, %173 : vector<10x32xf32>
    %cst_65 = arith.constant 9.99999974E-6 : f32
    %175 = vector.broadcast %cst_65 : f32 to vector<10x1xf32>
    %176 = arith.addf %172, %175 : vector<10x1xf32>
    %177 = math.rsqrt %176 : vector<10x1xf32>
    %178 = vector.broadcast %177 : vector<10x1xf32> to vector<10x32xf32>
    %179 = arith.mulf %174, %178 : vector<10x32xf32>
    %180 = vector.broadcast %160 : vector<1x32xf32> to vector<10x32xf32>
    %181 = arith.mulf %179, %180 : vector<10x32xf32>
    %182 = vector.broadcast %161 : vector<1x32xf32> to vector<10x32xf32>
    %183 = arith.addf %181, %182 : vector<10x32xf32>
    %184 = arith.truncf %183 : vector<10x32xf32> to vector<10x32xbf16>
    %cst_66 = arith.constant dense<0.000000e+00> : vector<10x128xf32>
    %185 = tpu.matmul %184, %42, %cst_66 {dimension_numbers = #tpu.dot_dimension_numbers<[1], [0], [0], [1], [0, 0, 1, 1], [], []>} : vector<10x32xbf16>, vector<32x128xbf16>, vector<10x128xf32> -> vector<10x128xf32>
    %c48 = arith.constant 48 : index
    %c0_67 = arith.constant 0 : index
    %186 = vector.load %arg3[%c48, %c0_67] : memref<64x128xf32, #tpu.memory_space<vmem>>, vector<1x128xf32>
    %187 = vector.broadcast %186 : vector<1x128xf32> to vector<10x128xf32>
    %188 = arith.addf %185, %187 : vector<10x128xf32>
    %cst_68 = arith.constant 1.702000e+00 : f32
    %189 = vector.broadcast %cst_68 : f32 to vector<10x128xf32>
    %190 = arith.mulf %189, %188 : vector<10x128xf32>
    %191 = arith.negf %190 : vector<10x128xf32>
    %192 = math.exp %191 : vector<10x128xf32>
    %cst_69 = arith.constant 1.000000e+00 : f32
    %193 = vector.broadcast %cst_69 : f32 to vector<10x128xf32>
    %194 = arith.addf %193, %192 : vector<10x128xf32>
    %195 = arith.divf %193, %194 : vector<10x128xf32>
    %196 = arith.mulf %188, %195 : vector<10x128xf32>
    %197 = arith.truncf %196 : vector<10x128xf32> to vector<10x128xbf16>
    %cst_70 = arith.constant dense<0.000000e+00> : vector<10x32xf32>
    %198 = tpu.matmul %197, %41, %cst_70 {dimension_numbers = #tpu.dot_dimension_numbers<[1], [0], [0], [1], [0, 0, 1, 1], [], []>} : vector<10x128xbf16>, vector<128x32xbf16>, vector<10x32xf32> -> vector<10x32xf32>
    %c49 = arith.constant 49 : index
    %c0_71 = arith.constant 0 : index
    %199 = vector.load %arg3[%c49, %c0_71] : memref<64x128xf32, #tpu.memory_space<vmem>>, vector<1x32xf32>
    %200 = vector.broadcast %199 : vector<1x32xf32> to vector<10x32xf32>
    %201 = arith.addf %198, %200 : vector<10x32xf32>
    %202 = arith.addf %159, %201 : vector<10x32xf32>
    %c256 = arith.constant 256 : index
    %c0_72 = arith.constant 0 : index
    %203 = vector.load %arg1[%c256, %c0_72] : memref<704x32xbf16, #tpu.memory_space<vmem>>, vector<32x32xbf16>
    %c288 = arith.constant 288 : index
    %c0_73 = arith.constant 0 : index
    %204 = vector.load %arg1[%c288, %c0_73] : memref<704x32xbf16, #tpu.memory_space<vmem>>, vector<32x32xbf16>
    %c320 = arith.constant 320 : index
    %c0_74 = arith.constant 0 : index
    %205 = vector.load %arg1[%c320, %c0_74] : memref<704x32xbf16, #tpu.memory_space<vmem>>, vector<32x32xbf16>
    %c352 = arith.constant 352 : index
    %c0_75 = arith.constant 0 : index
    %206 = vector.load %arg1[%c352, %c0_75] : memref<704x32xbf16, #tpu.memory_space<vmem>>, vector<32x32xbf16>
    %c384 = arith.constant 384 : index
    %c0_76 = arith.constant 0 : index
    %207 = vector.load %arg1[%c384, %c0_76] : memref<704x32xbf16, #tpu.memory_space<vmem>>, vector<128x32xbf16>
    %c32_77 = arith.constant 32 : index
    %c0_78 = arith.constant 0 : index
    %208 = vector.load %arg2[%c32_77, %c0_78] : memref<64x128xbf16, #tpu.memory_space<vmem>>, vector<32x128xbf16>
    %c50 = arith.constant 50 : index
    %c0_79 = arith.constant 0 : index
    %209 = vector.load %arg3[%c50, %c0_79] : memref<64x128xf32, #tpu.memory_space<vmem>>, vector<1x32xf32>
    %c51 = arith.constant 51 : index
    %c0_80 = arith.constant 0 : index
    %210 = vector.load %arg3[%c51, %c0_80] : memref<64x128xf32, #tpu.memory_space<vmem>>, vector<1x32xf32>
    %cst_81 = arith.constant dense<0.000000e+00> : vector<10xf32>
    %211 = vector.multi_reduction <add>, %202, %cst_81 [1] : vector<10x32xf32> to vector<10xf32>
    %212 = vector.shape_cast %211 : vector<10xf32> to vector<10x1xf32>
    %cst_82 = arith.constant 3.200000e+01 : f32
    %213 = vector.broadcast %cst_82 : f32 to vector<10x1xf32>
    %214 = arith.divf %212, %213 : vector<10x1xf32>
    %215 = arith.mulf %202, %202 : vector<10x32xf32>
    %cst_83 = arith.constant dense<0.000000e+00> : vector<10xf32>
    %216 = vector.multi_reduction <add>, %215, %cst_83 [1] : vector<10x32xf32> to vector<10xf32>
    %217 = vector.shape_cast %216 : vector<10xf32> to vector<10x1xf32>
    %cst_84 = arith.constant 3.200000e+01 : f32
    %218 = vector.broadcast %cst_84 : f32 to vector<10x1xf32>
    %219 = arith.divf %217, %218 : vector<10x1xf32>
    %220 = arith.mulf %214, %214 : vector<10x1xf32>
    %221 = arith.subf %219, %220 : vector<10x1xf32>
    %222 = vector.broadcast %214 : vector<10x1xf32> to vector<10x32xf32>
    %223 = arith.subf %202, %222 : vector<10x32xf32>
    %cst_85 = arith.constant 9.99999974E-6 : f32
    %224 = vector.broadcast %cst_85 : f32 to vector<10x1xf32>
    %225 = arith.addf %221, %224 : vector<10x1xf32>
    %226 = math.rsqrt %225 : vector<10x1xf32>
    %227 = vector.broadcast %226 : vector<10x1xf32> to vector<10x32xf32>
    %228 = arith.mulf %223, %227 : vector<10x32xf32>
    %229 = vector.broadcast %209 : vector<1x32xf32> to vector<10x32xf32>
    %230 = arith.mulf %228, %229 : vector<10x32xf32>
    %231 = vector.broadcast %210 : vector<1x32xf32> to vector<10x32xf32>
    %232 = arith.addf %230, %231 : vector<10x32xf32>
    %233 = arith.truncf %232 : vector<10x32xf32> to vector<10x32xbf16>
    %cst_86 = arith.constant dense<0.000000e+00> : vector<10x32xf32>
    %234 = tpu.matmul %233, %203, %cst_86 {dimension_numbers = #tpu.dot_dimension_numbers<[1], [0], [0], [1], [0, 0, 1, 1], [], []>} : vector<10x32xbf16>, vector<32x32xbf16>, vector<10x32xf32> -> vector<10x32xf32>
    %c52 = arith.constant 52 : index
    %c0_87 = arith.constant 0 : index
    %235 = vector.load %arg3[%c52, %c0_87] : memref<64x128xf32, #tpu.memory_space<vmem>>, vector<1x32xf32>
    %236 = vector.broadcast %235 : vector<1x32xf32> to vector<10x32xf32>
    %237 = arith.addf %234, %236 : vector<10x32xf32>
    %cst_88 = arith.constant dense<0.000000e+00> : vector<10x32xf32>
    %238 = tpu.matmul %233, %204, %cst_88 {dimension_numbers = #tpu.dot_dimension_numbers<[1], [0], [0], [1], [0, 0, 1, 1], [], []>} : vector<10x32xbf16>, vector<32x32xbf16>, vector<10x32xf32> -> vector<10x32xf32>
    %c53 = arith.constant 53 : index
    %c0_89 = arith.constant 0 : index
    %239 = vector.load %arg3[%c53, %c0_89] : memref<64x128xf32, #tpu.memory_space<vmem>>, vector<1x32xf32>
    %240 = vector.broadcast %239 : vector<1x32xf32> to vector<10x32xf32>
    %241 = arith.addf %238, %240 : vector<10x32xf32>
    %cst_90 = arith.constant dense<0.000000e+00> : vector<10x32xf32>
    %242 = tpu.matmul %233, %205, %cst_90 {dimension_numbers = #tpu.dot_dimension_numbers<[1], [0], [0], [1], [0, 0, 1, 1], [], []>} : vector<10x32xbf16>, vector<32x32xbf16>, vector<10x32xf32> -> vector<10x32xf32>
    %c54 = arith.constant 54 : index
    %c0_91 = arith.constant 0 : index
    %243 = vector.load %arg3[%c54, %c0_91] : memref<64x128xf32, #tpu.memory_space<vmem>>, vector<1x32xf32>
    %244 = vector.broadcast %243 : vector<1x32xf32> to vector<10x32xf32>
    %245 = arith.addf %242, %244 : vector<10x32xf32>
    %246 = tpu.transpose %241, [1, 0] : vector<10x32xf32> -> vector<32x10xf32>
    %cst_92 = arith.constant 0.000000e+00 : f32
    %247 = vector.broadcast %cst_92 : f32 to vector<10x32xf32>
    %248 = vector.broadcast %6 : vector<1x32xf32> to vector<10x32xf32>
    %249 = arith.mulf %237, %248 : vector<10x32xf32>
    %cst_93 = arith.constant dense<0.000000e+00> : vector<10x10xf32>
    %250 = tpu.matmul %249, %246, %cst_93 {dimension_numbers = #tpu.dot_dimension_numbers<[1], [0], [0], [1], [0, 0, 1, 1], [], []>} : vector<10x32xf32>, vector<32x10xf32>, vector<10x10xf32> -> vector<10x10xf32>
    %251 = arith.addf %250, %5 : vector<10x10xf32>
    %cst_94 = arith.constant dense<0xFF800000> : vector<10xf32>
    %252 = vector.multi_reduction <maximumf>, %251, %cst_94 [1] : vector<10x10xf32> to vector<10xf32>
    %253 = vector.shape_cast %252 : vector<10xf32> to vector<10x1xf32>
    %254 = vector.broadcast %253 : vector<10x1xf32> to vector<10x10xf32>
    %255 = arith.subf %251, %254 : vector<10x10xf32>
    %256 = math.exp %255 : vector<10x10xf32>
    %cst_95 = arith.constant dense<0.000000e+00> : vector<10xf32>
    %257 = vector.multi_reduction <add>, %256, %cst_95 [1] : vector<10x10xf32> to vector<10xf32>
    %258 = vector.shape_cast %257 : vector<10xf32> to vector<10x1xf32>
    %259 = tpu.reciprocal %258 {approx = true} : vector<10x1xf32> -> vector<10x1xf32>
    %260 = vector.broadcast %259 : vector<10x1xf32> to vector<10x10xf32>
    %261 = arith.mulf %256, %260 : vector<10x10xf32>
    %262 = vector.broadcast %6 : vector<1x32xf32> to vector<10x32xf32>
    %263 = arith.mulf %245, %262 : vector<10x32xf32>
    %cst_96 = arith.constant dense<0.000000e+00> : vector<10x32xf32>
    %264 = tpu.matmul %261, %263, %cst_96 {dimension_numbers = #tpu.dot_dimension_numbers<[1], [0], [0], [1], [0, 0, 1, 1], [], []>} : vector<10x10xf32>, vector<10x32xf32>, vector<10x32xf32> -> vector<10x32xf32>
    %265 = arith.addf %247, %264 : vector<10x32xf32>
    %266 = vector.broadcast %7 : vector<1x32xf32> to vector<10x32xf32>
    %267 = arith.mulf %237, %266 : vector<10x32xf32>
    %cst_97 = arith.constant dense<0.000000e+00> : vector<10x10xf32>
    %268 = tpu.matmul %267, %246, %cst_97 {dimension_numbers = #tpu.dot_dimension_numbers<[1], [0], [0], [1], [0, 0, 1, 1], [], []>} : vector<10x32xf32>, vector<32x10xf32>, vector<10x10xf32> -> vector<10x10xf32>
    %269 = arith.addf %268, %5 : vector<10x10xf32>
    %cst_98 = arith.constant dense<0xFF800000> : vector<10xf32>
    %270 = vector.multi_reduction <maximumf>, %269, %cst_98 [1] : vector<10x10xf32> to vector<10xf32>
    %271 = vector.shape_cast %270 : vector<10xf32> to vector<10x1xf32>
    %272 = vector.broadcast %271 : vector<10x1xf32> to vector<10x10xf32>
    %273 = arith.subf %269, %272 : vector<10x10xf32>
    %274 = math.exp %273 : vector<10x10xf32>
    %cst_99 = arith.constant dense<0.000000e+00> : vector<10xf32>
    %275 = vector.multi_reduction <add>, %274, %cst_99 [1] : vector<10x10xf32> to vector<10xf32>
    %276 = vector.shape_cast %275 : vector<10xf32> to vector<10x1xf32>
    %277 = tpu.reciprocal %276 {approx = true} : vector<10x1xf32> -> vector<10x1xf32>
    %278 = vector.broadcast %277 : vector<10x1xf32> to vector<10x10xf32>
    %279 = arith.mulf %274, %278 : vector<10x10xf32>
    %280 = vector.broadcast %7 : vector<1x32xf32> to vector<10x32xf32>
    %281 = arith.mulf %245, %280 : vector<10x32xf32>
    %cst_100 = arith.constant dense<0.000000e+00> : vector<10x32xf32>
    %282 = tpu.matmul %279, %281, %cst_100 {dimension_numbers = #tpu.dot_dimension_numbers<[1], [0], [0], [1], [0, 0, 1, 1], [], []>} : vector<10x10xf32>, vector<10x32xf32>, vector<10x32xf32> -> vector<10x32xf32>
    %283 = arith.addf %265, %282 : vector<10x32xf32>
    %284 = vector.broadcast %8 : vector<1x32xf32> to vector<10x32xf32>
    %285 = arith.mulf %237, %284 : vector<10x32xf32>
    %cst_101 = arith.constant dense<0.000000e+00> : vector<10x10xf32>
    %286 = tpu.matmul %285, %246, %cst_101 {dimension_numbers = #tpu.dot_dimension_numbers<[1], [0], [0], [1], [0, 0, 1, 1], [], []>} : vector<10x32xf32>, vector<32x10xf32>, vector<10x10xf32> -> vector<10x10xf32>
    %287 = arith.addf %286, %5 : vector<10x10xf32>
    %cst_102 = arith.constant dense<0xFF800000> : vector<10xf32>
    %288 = vector.multi_reduction <maximumf>, %287, %cst_102 [1] : vector<10x10xf32> to vector<10xf32>
    %289 = vector.shape_cast %288 : vector<10xf32> to vector<10x1xf32>
    %290 = vector.broadcast %289 : vector<10x1xf32> to vector<10x10xf32>
    %291 = arith.subf %287, %290 : vector<10x10xf32>
    %292 = math.exp %291 : vector<10x10xf32>
    %cst_103 = arith.constant dense<0.000000e+00> : vector<10xf32>
    %293 = vector.multi_reduction <add>, %292, %cst_103 [1] : vector<10x10xf32> to vector<10xf32>
    %294 = vector.shape_cast %293 : vector<10xf32> to vector<10x1xf32>
    %295 = tpu.reciprocal %294 {approx = true} : vector<10x1xf32> -> vector<10x1xf32>
    %296 = vector.broadcast %295 : vector<10x1xf32> to vector<10x10xf32>
    %297 = arith.mulf %292, %296 : vector<10x10xf32>
    %298 = vector.broadcast %8 : vector<1x32xf32> to vector<10x32xf32>
    %299 = arith.mulf %245, %298 : vector<10x32xf32>
    %cst_104 = arith.constant dense<0.000000e+00> : vector<10x32xf32>
    %300 = tpu.matmul %297, %299, %cst_104 {dimension_numbers = #tpu.dot_dimension_numbers<[1], [0], [0], [1], [0, 0, 1, 1], [], []>} : vector<10x10xf32>, vector<10x32xf32>, vector<10x32xf32> -> vector<10x32xf32>
    %301 = arith.addf %283, %300 : vector<10x32xf32>
    %302 = vector.broadcast %9 : vector<1x32xf32> to vector<10x32xf32>
    %303 = arith.mulf %237, %302 : vector<10x32xf32>
    %cst_105 = arith.constant dense<0.000000e+00> : vector<10x10xf32>
    %304 = tpu.matmul %303, %246, %cst_105 {dimension_numbers = #tpu.dot_dimension_numbers<[1], [0], [0], [1], [0, 0, 1, 1], [], []>} : vector<10x32xf32>, vector<32x10xf32>, vector<10x10xf32> -> vector<10x10xf32>
    %305 = arith.addf %304, %5 : vector<10x10xf32>
    %cst_106 = arith.constant dense<0xFF800000> : vector<10xf32>
    %306 = vector.multi_reduction <maximumf>, %305, %cst_106 [1] : vector<10x10xf32> to vector<10xf32>
    %307 = vector.shape_cast %306 : vector<10xf32> to vector<10x1xf32>
    %308 = vector.broadcast %307 : vector<10x1xf32> to vector<10x10xf32>
    %309 = arith.subf %305, %308 : vector<10x10xf32>
    %310 = math.exp %309 : vector<10x10xf32>
    %cst_107 = arith.constant dense<0.000000e+00> : vector<10xf32>
    %311 = vector.multi_reduction <add>, %310, %cst_107 [1] : vector<10x10xf32> to vector<10xf32>
    %312 = vector.shape_cast %311 : vector<10xf32> to vector<10x1xf32>
    %313 = tpu.reciprocal %312 {approx = true} : vector<10x1xf32> -> vector<10x1xf32>
    %314 = vector.broadcast %313 : vector<10x1xf32> to vector<10x10xf32>
    %315 = arith.mulf %310, %314 : vector<10x10xf32>
    %316 = vector.broadcast %9 : vector<1x32xf32> to vector<10x32xf32>
    %317 = arith.mulf %245, %316 : vector<10x32xf32>
    %cst_108 = arith.constant dense<0.000000e+00> : vector<10x32xf32>
    %318 = tpu.matmul %315, %317, %cst_108 {dimension_numbers = #tpu.dot_dimension_numbers<[1], [0], [0], [1], [0, 0, 1, 1], [], []>} : vector<10x10xf32>, vector<10x32xf32>, vector<10x32xf32> -> vector<10x32xf32>
    %319 = arith.addf %301, %318 : vector<10x32xf32>
    %320 = arith.truncf %319 : vector<10x32xf32> to vector<10x32xbf16>
    %cst_109 = arith.constant dense<0.000000e+00> : vector<10x32xf32>
    %321 = tpu.matmul %320, %206, %cst_109 {dimension_numbers = #tpu.dot_dimension_numbers<[1], [0], [0], [1], [0, 0, 1, 1], [], []>} : vector<10x32xbf16>, vector<32x32xbf16>, vector<10x32xf32> -> vector<10x32xf32>
    %c55 = arith.constant 55 : index
    %c0_110 = arith.constant 0 : index
    %322 = vector.load %arg3[%c55, %c0_110] : memref<64x128xf32, #tpu.memory_space<vmem>>, vector<1x32xf32>
    %323 = vector.broadcast %322 : vector<1x32xf32> to vector<10x32xf32>
    %324 = arith.addf %321, %323 : vector<10x32xf32>
    %325 = arith.addf %202, %324 : vector<10x32xf32>
    %c56 = arith.constant 56 : index
    %c0_111 = arith.constant 0 : index
    %326 = vector.load %arg3[%c56, %c0_111] : memref<64x128xf32, #tpu.memory_space<vmem>>, vector<1x32xf32>
    %c57 = arith.constant 57 : index
    %c0_112 = arith.constant 0 : index
    %327 = vector.load %arg3[%c57, %c0_112] : memref<64x128xf32, #tpu.memory_space<vmem>>, vector<1x32xf32>
    %cst_113 = arith.constant dense<0.000000e+00> : vector<10xf32>
    %328 = vector.multi_reduction <add>, %325, %cst_113 [1] : vector<10x32xf32> to vector<10xf32>
    %329 = vector.shape_cast %328 : vector<10xf32> to vector<10x1xf32>
    %cst_114 = arith.constant 3.200000e+01 : f32
    %330 = vector.broadcast %cst_114 : f32 to vector<10x1xf32>
    %331 = arith.divf %329, %330 : vector<10x1xf32>
    %332 = arith.mulf %325, %325 : vector<10x32xf32>
    %cst_115 = arith.constant dense<0.000000e+00> : vector<10xf32>
    %333 = vector.multi_reduction <add>, %332, %cst_115 [1] : vector<10x32xf32> to vector<10xf32>
    %334 = vector.shape_cast %333 : vector<10xf32> to vector<10x1xf32>
    %cst_116 = arith.constant 3.200000e+01 : f32
    %335 = vector.broadcast %cst_116 : f32 to vector<10x1xf32>
    %336 = arith.divf %334, %335 : vector<10x1xf32>
    %337 = arith.mulf %331, %331 : vector<10x1xf32>
    %338 = arith.subf %336, %337 : vector<10x1xf32>
    %339 = vector.broadcast %331 : vector<10x1xf32> to vector<10x32xf32>
    %340 = arith.subf %325, %339 : vector<10x32xf32>
    %cst_117 = arith.constant 9.99999974E-6 : f32
    %341 = vector.broadcast %cst_117 : f32 to vector<10x1xf32>
    %342 = arith.addf %338, %341 : vector<10x1xf32>
    %343 = math.rsqrt %342 : vector<10x1xf32>
    %344 = vector.broadcast %343 : vector<10x1xf32> to vector<10x32xf32>
    %345 = arith.mulf %340, %344 : vector<10x32xf32>
    %346 = vector.broadcast %326 : vector<1x32xf32> to vector<10x32xf32>
    %347 = arith.mulf %345, %346 : vector<10x32xf32>
    %348 = vector.broadcast %327 : vector<1x32xf32> to vector<10x32xf32>
    %349 = arith.addf %347, %348 : vector<10x32xf32>
    %350 = arith.truncf %349 : vector<10x32xf32> to vector<10x32xbf16>
    %cst_118 = arith.constant dense<0.000000e+00> : vector<10x128xf32>
    %351 = tpu.matmul %350, %208, %cst_118 {dimension_numbers = #tpu.dot_dimension_numbers<[1], [0], [0], [1], [0, 0, 1, 1], [], []>} : vector<10x32xbf16>, vector<32x128xbf16>, vector<10x128xf32> -> vector<10x128xf32>
    %c58 = arith.constant 58 : index
    %c0_119 = arith.constant 0 : index
    %352 = vector.load %arg3[%c58, %c0_119] : memref<64x128xf32, #tpu.memory_space<vmem>>, vector<1x128xf32>
    %353 = vector.broadcast %352 : vector<1x128xf32> to vector<10x128xf32>
    %354 = arith.addf %351, %353 : vector<10x128xf32>
    %cst_120 = arith.constant 1.702000e+00 : f32
    %355 = vector.broadcast %cst_120 : f32 to vector<10x128xf32>
    %356 = arith.mulf %355, %354 : vector<10x128xf32>
    %357 = arith.negf %356 : vector<10x128xf32>
    %358 = math.exp %357 : vector<10x128xf32>
    %cst_121 = arith.constant 1.000000e+00 : f32
    %359 = vector.broadcast %cst_121 : f32 to vector<10x128xf32>
    %360 = arith.addf %359, %358 : vector<10x128xf32>
    %361 = arith.divf %359, %360 : vector<10x128xf32>
    %362 = arith.mulf %354, %361 : vector<10x128xf32>
    %363 = arith.truncf %362 : vector<10x128xf32> to vector<10x128xbf16>
    %cst_122 = arith.constant dense<0.000000e+00> : vector<10x32xf32>
    %364 = tpu.matmul %363, %207, %cst_122 {dimension_numbers = #tpu.dot_dimension_numbers<[1], [0], [0], [1], [0, 0, 1, 1], [], []>} : vector<10x128xbf16>, vector<128x32xbf16>, vector<10x32xf32> -> vector<10x32xf32>
    %c59 = arith.constant 59 : index
    %c0_123 = arith.constant 0 : index
    %365 = vector.load %arg3[%c59, %c0_123] : memref<64x128xf32, #tpu.memory_space<vmem>>, vector<1x32xf32>
    %366 = vector.broadcast %365 : vector<1x32xf32> to vector<10x32xf32>
    %367 = arith.addf %364, %366 : vector<10x32xf32>
    %368 = arith.addf %325, %367 : vector<10x32xf32>
    %369 = vector.extract_strided_slice %368 {offsets = [0, 0], sizes = [2, 32], strides = [1, 1]} : vector<10x32xf32> to vector<2x32xf32>
    %cst_124 = arith.constant dense<0.000000e+00> : vector<2xf32>
    %370 = vector.multi_reduction <add>, %369, %cst_124 [1] : vector<2x32xf32> to vector<2xf32>
    %371 = vector.shape_cast %370 : vector<2xf32> to vector<2x1xf32>
    %cst_125 = arith.constant 3.200000e+01 : f32
    %372 = vector.broadcast %cst_125 : f32 to vector<2x1xf32>
    %373 = arith.divf %371, %372 : vector<2x1xf32>
    %374 = arith.mulf %369, %369 : vector<2x32xf32>
    %cst_126 = arith.constant dense<0.000000e+00> : vector<2xf32>
    %375 = vector.multi_reduction <add>, %374, %cst_126 [1] : vector<2x32xf32> to vector<2xf32>
    %376 = vector.shape_cast %375 : vector<2xf32> to vector<2x1xf32>
    %cst_127 = arith.constant 3.200000e+01 : f32
    %377 = vector.broadcast %cst_127 : f32 to vector<2x1xf32>
    %378 = arith.divf %376, %377 : vector<2x1xf32>
    %379 = arith.mulf %373, %373 : vector<2x1xf32>
    %380 = arith.subf %378, %379 : vector<2x1xf32>
    %381 = vector.broadcast %373 : vector<2x1xf32> to vector<2x32xf32>
    %382 = arith.subf %369, %381 : vector<2x32xf32>
    %cst_128 = arith.constant 9.99999974E-6 : f32
    %383 = vector.broadcast %cst_128 : f32 to vector<2x1xf32>
    %384 = arith.addf %380, %383 : vector<2x1xf32>
    %385 = math.rsqrt %384 : vector<2x1xf32>
    %386 = vector.broadcast %385 : vector<2x1xf32> to vector<2x32xf32>
    %387 = arith.mulf %382, %386 : vector<2x32xf32>
    %388 = vector.broadcast %2 : vector<1x32xf32> to vector<2x32xf32>
    %389 = arith.mulf %387, %388 : vector<2x32xf32>
    %390 = vector.broadcast %3 : vector<1x32xf32> to vector<2x32xf32>
    %391 = arith.addf %389, %390 : vector<2x32xf32>
    %c0_129 = arith.constant 0 : index
    %c0_130 = arith.constant 0 : index
    %392 = vector.load %arg4[%c0_129, %c0_130] : memref<2x32xf32, #tpu.memory_space<vmem>>, vector<2x32xf32>
    tpu.vector_store %arg4[%c0_129, %c0_130], %391 {strides = array<i32>} : memref<2x32xf32, #tpu.memory_space<vmem>>, vector<2x32xf32>,
    return
  }
}

</mosaic_0001>

<bundles_post_ra>
// kernel: reference_encoder_forward.1
= control target key start
LH: loop header
LB: loop body
LE: loop exit
PB: predicated region body
PF: predicated region fallthrough
CT: control target
= control target key end

     0   :  { %v3582_v1 = vmov 0   ;;  %vm133_vm0 = vcmask 523264   ;;  %s4284_s0 = inlined_call_operand.vmem [shape: f32[10,192], index: 0, kind: input, shape index: {}]   ;;  %s4285_s1 = inlined_call_operand.vmem [shape: bf16[704,32], index: 1, kind: input, shape index: {}]   ;;  %s4286_s2 = inlined_call_operand.vmem [shape: bf16[64,128], index: 2, kind: input, shape index: {}]   ;;  %s4287_s3 = inlined_call_operand.vmem [shape: f32[64,128], index: 3, kind: input, shape index: {}]   ;;  %s4288_s4 = inlined_call_operand.hbm [shape: f32[2,32], index: 4, kind: output, shape index: {}]  }
   0x1   :  { %v3405_v0 = vld [vmem:[%s4285_s1 + $0x138] sm:$0xff]   ;;  %137 = vmatprep.subr.bf16.mxu0 %v3582_v1  ;;  %v3406_v2 = vld [vmem:[%s4285_s1 + $0x130] sm:$0xff]   ;;  %v3407_v3 = vld [vmem:[%s4285_s1 + $0x128] sm:$0xff]  }
   0x2   :  { %138 = vmatpush1.bf16.msra.mxu0 %v3405_v0  ;;  %v3408_v4 = vld [vmem:[%s4285_s1 + $0x120] sm:$0xff]   ;;  %v56_v5 = vld [vmem:[%s4284_s0 + $0x8] sm:$0xff]  ;;  %v58_v6 = vld [vmem:[%s4284_s0 + $0x18] sm:$0x3] }
   0x3   :  { %139 = vmatprep.subr.bf16.mxu0 %v3582_v1  ;;  %v3409_v7 = vld [vmem:[%s4285_s1 + $0x118] sm:$0xff]   ;;  %v60_v8 = vpack.c.bf16 %v58_v6, %v56_v5  ;;  %v3410_v9 = vld [vmem:[%s4285_s1 + $0x110] sm:$0xff]   ;;  %v3411_v10 = vld [vmem:[%s4285_s1 + $0x108] sm:$0xff]  }
   0x4   :  { %v3412_v11 = vld [vmem:[%s4285_s1 + $0x100] sm:$0xff]   ;;  %v3413_v12 = vld [vmem:[%s4285_s1 + $0x158] sm:$0xff]   ;;  %v3414_v13 = vld [vmem:[%s4285_s1 + $0x150] sm:$0xff]  }
   0x5   :  { %2922 = vmatprep.mubr.msk.bf16.mxu0 %vm133_vm0, %v60_v8 }
   0x6   :  { %140 = vmatpush1.bf16.msra.mxu0 %v3406_v2 }
   0x7   :  { %141 = vmatprep.subr.bf16.mxu0 %v3582_v1 }
   0xa   :  { %142 = vmatpush1.bf16.msra.mxu0 %v3407_v3 }
   0xb   :  { %143 = vmatprep.subr.bf16.mxu0 %v3582_v1 }
   0xe   :  { %144 = vmatpush1.bf16.msra.mxu0 %v3408_v4 }
   0xf   :  { %145 = vmatprep.subr.bf16.mxu0 %v3582_v1 }
  0x12   :  { %146 = vmatpush1.bf16.msra.mxu0 %v3409_v7 }
  0x13   :  { %147 = vmatprep.subr.bf16.mxu0 %v3582_v1 }
  0x16   :  { %148 = vmatpush1.bf16.msra.mxu0 %v3410_v9 }
  0x17   :  { %149 = vmatprep.subr.bf16.mxu0 %v3582_v1 }
  0x1a   :  { %150 = vmatpush1.bf16.msra.mxu0 %v3411_v10 }
  0x1b   :  { %151 = vmatprep.subr.bf16.mxu0 %v3582_v1 }
  0x1e   :  { %152 = vmatpush1.bf16.msra.mxu0 %v3412_v11 }
  0x1f   :  { %161 = vmatprep.subr.bf16.mxu0 %v3582_v1 }
  0x22   :  { %162 = vmatpush2.bf16.msra.mxu0 %v3413_v12 }
  0x23   :  { %163 = vmatprep.subr.bf16.mxu0 %v3582_v1 }
  0x24   :  { %9 = vsyncpa [#allocation3], 0  ;;  %v3415_v14 = vld [vmem:[%s4285_s1 + $0x148] sm:$0xff]   ;;  %v3416_v15 = vld [vmem:[%s4285_s1 + $0x140] sm:$0xff]   ;;  %vm178_vm1 = vcmask 261120   ;;  %vm182_vm2 = vcmask 254976  }
  0x25   :  { %v55_v16 = vld [vmem:[%s4284_s0] sm:$0xff]  ;;  %v57_v17 = vld [vmem:[%s4284_s0 + $0x10] sm:$0x3]  ;;  %v24_v23 = vld [vmem:[%s4287_s3 + $0x8] sm:$0x3]  ;;  %v3583_v2 = vmov 0.0  }
  0x26   :  { %164 = vmatpush2.bf16.msra.mxu0 %v3414_v13  ;;  %v59_v18 = vpack.c.bf16 %v57_v17, %v55_v16  ;;  %v23_v19 = vld [vmem:[%s4287_s3] sm:$0xff]  ;;  %v2923_v49 = vld [vmem:[%s4287_s3 + $0x1a] ss:$0 sm:$0xff]  ;;  %v2924_v51 = vld [vmem:[%s4287_s3 + $0x1b] ss:$0 sm:$0xff]  ;;  %3169 = vmatprep.subr.bf16.mxu1 %v3583_v2  ;;  %vm3584_vm3 = vmmov 0  }
  0x27   :  { %165 = vmatprep.subr.bf16.mxu0 %v3582_v1  ;;  %3173 = vmatprep.mubr.msk.bf16.mxu1 %vm3584_vm3, %v3583_v2  ;;  %v3418_v3 = vld [vmem:[%s4285_s1] sm:$0xff]   ;;  %vm717_vm4 = vcmask 1041408   ;;  %vm578_vm5 = vcmask 74752   ;;  %vm574_vm6 = vcmask 80896   ;;  %s3585_s29 = smov [#allocation2]  }
  0x2a   :  { %166 = vmatpush2.bf16.msra.mxu0 %v3415_v14 }
  0x2b   :  { %167 = vmatprep.subr.bf16.mxu0 %v3582_v1  ;;  %v3417_v1 = vld [vmem:[%s4285_s1 + $0x8] sm:$0xff]  }
  0x2c   :  { %3170 = vmatpush3.bf16.msra.mxu1 %v3417_v1 }
  0x2d   :  { %3171 = vmatprep.subr.bf16.mxu1 %v3583_v2 }
  0x2e   :  { %168 = vmatpush2.bf16.msra.mxu0 %v3416_v15 }
  0x30   :  { %3172 = vmatpush3.bf16.msra.mxu1 %v3418_v3 }
  0x31   :  { %170 = vmatmul.mubr.bf16.vlgmr.msra.gmra.mxu0 %v59_v18  ;;  %3177 = vmatprep.subr.bf16.mxu1 %v3583_v2 }
  0xf1   :  { %v171_v20 = vpop.f32.mrf.mxu0 }
  0xf2   :  { %v172_v21 = vadd.f32 %v171_v20, %v23_v19 }
  0xf3   :  { %v173_v22 = vpop.f32.mrf.mxu0 }
  0xf4   :  { %v179_v24 = vsel %vm178_vm1, %v172_v21, 0.0  ;;  %v189_v25 = vmul.f32 %v172_v21, %v172_v21 }
  0xf5   :  { %v174_v26 = vpop.f32.mrf.mxu0  ;;  %180 = vadd.xlane.f32.xlu0 %v179_v24 }
  0xf6   :  { %v175_v27 = vadd.f32 %v174_v26, %v24_v23  ;;  %v191_v28 = vsel %vm178_vm1, %v189_v25, 0.0  ;;  %v2926_v26 = vld [vmem:[%s4287_s3 + $0x29] ss:$0 sm:$0xff] }
  0xf7   :  { %v176_v29 = vpop.f32.mrf.mxu0  ;;  %192 = vadd.xlane.f32.xlu1 %v191_v28 }
  0xf8   :  { %v183_v30 = vsel %vm182_vm2, %v175_v27, 0.0  ;;  %v190_v31 = vmul.f32 %v175_v27, %v175_v27 }
  0xf9   :  { %184 = vadd.xlane.f32.xlu0 %v183_v30  ;;  %v3419_v30 = vld [vmem:[%s4285_s1 + $0x18] sm:$0xff]  }
  0xfa   :  { %v194_v32 = vsel %vm182_vm2, %v190_v31, 0.0 }
  0xfb   :  { %195 = vadd.xlane.f32.xlu1 %v194_v32  ;;  %v3420_v32 = vld [vmem:[%s4285_s1 + $0x10] sm:$0xff]  }
 0x17e   :  { %v181_v33 = vpop.xlane.xlu0 %180 }
 0x17f   :  { %v187_v34 = vmul.f32 0.03125, %v181_v33  ;;  %v3421_v33 = vld [vmem:[%s4285_s1 + $0x28] sm:$0xff]  }
 0x180   :  { %v193_v35 = vpop.xlane.xlu1 %192 }
 0x181   :  { %v199_v36 = vmul.f32 %v187_v34, %v187_v34  ;;  %v197_v37 = vmul.f32 0.03125, %v193_v35  ;;  %v203_v47 = vsub.f32 %v172_v21, %v187_v34  ;;  %v2925_v21 = vld [vmem:[%s4287_s3 + $0x28] ss:$0 sm:$0xff]  ;;  %v3422_v34 = vld [vmem:[%s4285_s1 + $0x20] sm:$0xff]   ;;  %v2927_v35 = vld [vmem:[%s4287_s3 + $0x2a] ss:$0 sm:$0xff] }
 0x182   :  { %v185_v38 = vpop.xlane.xlu0 %184 }
 0x183   :  { %v201_v39 = vsub.f32 %v197_v37, %v199_v36  ;;  %v188_v40 = vmul.f32 0.03125, %v185_v38  ;;  %v3736_v37 = vld [vmem:[%s4287_s3 + $0x20] ss:$0 sm:$0xff]  ;;  %v3741_v38 = vld [vmem:[%s4287_s3 + $0x22] ss:$0 sm:$0xff] }
 0x184   :  { %v196_v41 = vpop.xlane.xlu1 %195 }
 0x185   :  { %v205_v42 = vadd.f32 1e-05, %v201_v39  ;;  %v200_v43 = vmul.f32 %v188_v40, %v188_v40  ;;  %v198_v44 = vmul.f32 0.03125, %v196_v41  ;;  %v204_v52 = vsub.f32 %v175_v27, %v188_v40 }
 0x187   :  { %3453 = vrsqrt.f32 %v205_v42  ;;  %v202_v45 = vsub.f32 %v198_v44, %v200_v43 }
 0x189   :  { %v206_v46 = vadd.f32 1e-05, %v202_v45 }
 0x18b   :  { %3455 = vrsqrt.f32 %v206_v46 }
 0x194   :  { %v3454_v48 = vpop.eup %3453 }
 0x195   :  { %v209_v50 = vmul.f32 %v3454_v48, %v203_v47  ;;  %v2931_v47 = vld [vmem:[%s4287_s3 + $0x2b] ss:$0 sm:$0xff] }
 0x197   :  { %v215_v53 = vmul.f32 %v2923_v49, %v209_v50 }
 0x198   :  { %v3456_v54 = vpop.eup %3455 }
 0x199   :  { %v3675_v55 = vadd.f32 %v2924_v51, %v215_v53  ;;  %v210_v56 = vmul.f32 %v3456_v54, %v204_v52  ;;  %v2935_v54 = vld [vmem:[%s4287_s3 + $0x2c] ss:$0 sm:$0xff] }
 0x19b   :  { %v261_v57 = vsel %vm178_vm1, %v3675_v55, 0.0  ;;  %v216_v58 = vmul.f32 %v2923_v49, %v210_v56  ;;  %v269_v59 = vmul.f32 %v3675_v55, %v3675_v55 }
 0x19c   :  { %262 = vadd.xlane.f32.xlu0 %v261_v57  ;;  %v3778_v57 = vld [vmem:[%s4287_s3 + $0x21] ss:$0 sm:$0xff] }
 0x19d   :  { %v3681_v60 = vadd.f32 %v2924_v51, %v216_v58  ;;  %v271_v62 = vsel %vm178_vm1, %v269_v59, 0.0 }
 0x19f   :  { %v264_v61 = vsel %vm182_vm2, %v3681_v60, 0.0  ;;  %v270_v63 = vmul.f32 %v3681_v60, %v3681_v60 }
 0x1a0   :  { %265 = vadd.xlane.f32.xlu1 %v264_v61  ;;  %272 = vadd.xlane.f32.xlu0 %v271_v62 }
 0x1a1   :  { %v274_v0 = vsel %vm182_vm2, %v270_v63, 0.0 }
 0x1a4   :  { %275 = vadd.xlane.f32.xlu1 %v274_v0  ;;  %v3797_v0 = vld [vmem:[%s4287_s3 + $0x23] ss:$0 sm:$0xff] }
 0x225   :  { %v263_v4 = vpop.xlane.xlu0 %262 }
 0x226   :  { %v267_v5 = vmul.f32 0.03125, %v263_v4 }
 0x228   :  { %v279_v8 = vmul.f32 %v267_v5, %v267_v5  ;;  %v283_v18 = vsub.f32 %v3675_v55, %v267_v5 }
 0x229   :  { %v266_v6 = vpop.xlane.xlu1 %265  ;;  %v273_v7 = vpop.xlane.xlu0 %272 }
 0x22a   :  { %v268_v9 = vmul.f32 0.03125, %v266_v6  ;;  %v277_v10 = vmul.f32 0.03125, %v273_v7 }
 0x22c   :  { %v281_v11 = vsub.f32 %v277_v10, %v279_v8  ;;  %v280_v13 = vmul.f32 %v268_v9, %v268_v9  ;;  %v284_v22 = vsub.f32 %v3681_v60, %v268_v9 }
 0x22d   :  { %v276_v12 = vpop.xlane.xlu1 %275 }
 0x22e   :  { %v285_v14 = vadd.f32 1e-05, %v281_v11  ;;  %v278_v15 = vmul.f32 0.03125, %v276_v12  ;;  %v3835_v12 = vld [vmem:[%s4287_s3 + $0x18] sm:$0x3] }
 0x230   :  { %3457 = vrsqrt.f32 %v285_v14  ;;  %v282_v16 = vsub.f32 %v278_v15, %v280_v13 }
 0x232   :  { %v286_v17 = vadd.f32 1e-05, %v282_v16  ;;  %v3841_v16 = vld [vmem:[%s4287_s3 + $0x10] sm:$0xff] }
 0x234   :  { %3459 = vrsqrt.f32 %v286_v17 }
 0x23d   :  { %v3458_v19 = vpop.eup %3457 }
 0x23e   :  { %v289_v20 = vmul.f32 %v3458_v19, %v283_v18 }
 0x240   :  { %v295_v25 = vmul.f32 %v2925_v21, %v289_v20 }
 0x241   :  { %v3460_v23 = vpop.eup %3459 }
 0x242   :  { %v290_v24 = vmul.f32 %v3460_v23, %v284_v22  ;;  %v301_v28 = vadd.f32 %v2926_v26, %v295_v25 }
 0x244   :  { %v296_v27 = vmul.f32 %v2925_v21, %v290_v24 }
 0x246   :  { %v302_v29 = vadd.f32 %v2926_v26, %v296_v27 }
 0x248   :  { %v303_v31 = vpack.c.bf16 %v302_v29, %v301_v28 }
 0x24a   :  { %3174 = vmatmul.mubr.msk.bf16.vlgmr.msra.gmra.mxu1 %vm178_vm1, %v303_v31 }
 0x24b   :  { %3178 = vmatpush3.bf16.msra.mxu1 %v3419_v30  ;;  %3181 = vmatprep.mubr.msk.bf16.mxu1 %vm3584_vm3, %v3583_v2 }
 0x24c   :  { %3179 = vmatprep.subr.bf16.mxu1 %v3583_v2 }
 0x24f   :  { %3180 = vmatpush3.bf16.msra.mxu1 %v3420_v32 }
 0x250   :  { %3185 = vmatprep.subr.bf16.mxu1 %v3583_v2 }
 0x252   :  { %3182 = vmatmul.mubr.msk.bf16.vlgmr.msra.gmra.mxu1 %vm178_vm1, %v303_v31 }
 0x253   :  { %3186 = vmatpush3.bf16.msra.mxu1 %v3421_v33  ;;  %3189 = vmatprep.mubr.msk.bf16.mxu1 %vm3584_vm3, %v3583_v2 }
 0x254   :  { %3187 = vmatprep.subr.bf16.mxu1 %v3583_v2 }
 0x257   :  { %3188 = vmatpush3.bf16.msra.mxu1 %v3422_v34 }
 0x25a   :  { %3190 = vmatmul.mubr.msk.bf16.vlgmr.msra.gmra.mxu1 %vm178_vm1, %v303_v31 }
 0x30a   :  { %v358_v36 = vpop.f32.mrf.mxu1 }
 0x30b   :  { %v3743_v39 = vadd.f32 %v2927_v35, %v358_v36 }
 0x30c   :  { %v3175_v40 = vpop.f32.mrf.mxu1 }
 0x30d   :  { %v485_v41 = vmul.f32 %v3736_v37, %v3743_v39  ;;  %v884_v42 = vmul.f32 %v3741_v38, %v3743_v39  ;;  %v604_v3 = vmul.f32 %v3778_v57, %v3743_v39 }
 0x30e   :  { %v361_v43 = vpop.f32.mrf.mxu1 }
 0x30f   :  { %3197 = vmatprep.mubr.msk.f32.mxu1 %vm178_vm1, %v485_v41  ;;  %3225 = vmatprep.mubr.msk.f32.mxu0 %vm178_vm1, %v884_v42  ;;  %v3766_v53 = vadd.f32 %v2927_v35, %v361_v43 }
 0x310   :  { %v3176_v44 = vpop.f32.mrf.mxu1 }
 0x311   :  { %v486_v59 = vmul.f32 %v3736_v37, %v3766_v53  ;;  %v885_v61 = vmul.f32 %v3741_v38, %v3766_v53  ;;  %v605_v7 = vmul.f32 %v3778_v57, %v3766_v53 }
 0x312   :  { %v416_v45 = vpop.f32.mrf.mxu1 }
 0x313   :  { %v3756_v51 = vadd.f32 %v2931_v47, %v416_v45 }
 0x314   :  { %v3183_v46 = vpop.f32.mrf.mxu1 }
 0x316   :  { %v419_v48 = vpop.f32.mrf.mxu1 }
 0x317   :  { %v3754_v49 = vadd.f32 %v2931_v47, %v419_v48 }
 0x318   :  { %v3184_v50 = vpop.f32.mrf.mxu1 }
 0x319   :  { %3193 = vmatprep.subr.msk.mxu1 %vm178_vm1, %v3754_v49  ;;  %3221 = vmatprep.subr.msk.mxu0 %vm178_vm1, %v3754_v49 }
 0x31a   :  { %v474_v52 = vpop.f32.mrf.mxu1  ;;  %3194 = vmatpush3.xpose.msk.msra.mxu1 %vm178_vm1, %v3754_v49  ;;  %3222 = vmatpush3.xpose.msk.msra.mxu0 %vm178_vm1, %v3754_v49 }
 0x31b   :  { %3195 = vmatprep.subr.msk.mxu1 %vm178_vm1, %v3756_v51  ;;  %3223 = vmatprep.subr.msk.mxu0 %vm178_vm1, %v3756_v51  ;;  %v3788_v62 = vadd.f32 %v2935_v54, %v474_v52 }
 0x31c   :  { %v3191_v56 = vpop.f32.mrf.mxu1 }
 0x31d   :  { %v1186_v5 = vmul.f32 %v3797_v0, %v3788_v62  ;;  %v709_v8 = vmul.f32 %v3778_v57, %v3788_v62 }
 0x31e   :  { %v477_v58 = vpop.f32.mrf.mxu1  ;;  %3196 = vmatpush3.xpose.msk.msra.mxu1 %vm178_vm1, %v3756_v51  ;;  %3224 = vmatpush3.xpose.msk.msra.mxu0 %vm178_vm1, %v3756_v51 }
 0x31f   :  { %v3790_v63 = vadd.f32 %v2935_v54, %v477_v58  ;;  %3200 = vmatprep.subr.msk.mxu1 %vm178_vm1, %v3754_v49 }
 0x320   :  { %v3192_v1 = vpop.f32.mrf.mxu1 }
 0x321   :  { %3198 = vmatmul.mubr.msk.f32.vlgmr.msra.gmra.mxu1 %vm178_vm1, %v486_v59  ;;  %3226 = vmatmul.mubr.msk.f32.vlgmr.msra.gmra.mxu0 %vm178_vm1, %v885_v61  ;;  %v1187_v4 = vmul.f32 %v3797_v0, %v3790_v63  ;;  %v710_v6 = vmul.f32 %v3778_v57, %v3790_v63  ;;  %v3828_v9 = vmul.f32 %v3736_v37, %v3790_v63 }
 0x322   :  { %3201 = vmatpush3.xpose.msk.msra.mxu1 %vm178_vm1, %v3754_v49  ;;  %3204 = vmatprep.mubr.msk.f32.mxu1 %vm178_vm1, %v604_v3 }
 0x323   :  { %3202 = vmatprep.subr.msk.mxu1 %vm178_vm1, %v3756_v51  ;;  %3242 = vmatprep.subr.msk.mxu0 %vm717_vm4, %v1187_v4 }
 0x324   :  { %3243 = vmatpush3.msk.msra.mxu0 %vm717_vm4, %v1187_v4 }
 0x325   :  { %3244 = vmatprep.subr.mxu0 %v1186_v5 }
 0x326   :  { %3203 = vmatpush3.xpose.msk.msra.mxu1 %vm178_vm1, %v3756_v51  ;;  %3245 = vmatpush3.msra.mxu0 %v1186_v5 }
 0x327   :  { %3207 = vmatprep.subr.msk.mxu1 %vm717_vm4, %v710_v6  ;;  %3265 = vmatprep.subr.bf16.mxu0 %v3583_v2 }
 0x329   :  { %3205 = vmatmul.mubr.msk.f32.vlgmr.msra.gmra.mxu1 %vm178_vm1, %v605_v7 }
 0x32a   :  { %3208 = vmatpush3.msk.msra.mxu1 %vm717_vm4, %v710_v6 }
 0x32b   :  { %3209 = vmatprep.subr.mxu1 %v709_v8 }
 0x32c   :  { %3210 = vmatpush3.msra.mxu1 %v709_v8 }
 0x32d   :  { %3214 = vmatprep.subr.msk.mxu1 %vm717_vm4, %v3828_v9 }
 0x3e1   :  { %v3199_v10 = vpop.f32.mrf.mxu1  ;;  %v3227_v15 = vpop.f32.mrf.mxu0 }
 0x3e2   :  { %v571_v18 = vadd.f32 %v3199_v10, %v3835_v12  ;;  %v964_v24 = vadd.f32 %v3227_v15, %v3835_v12 }
 0x3e3   :  { %v565_v11 = vpop.f32.mrf.mxu1  ;;  %v958_v23 = vpop.f32.mrf.mxu0 }
 0x3e4   :  { %v566_v21 = vadd.f32 %v565_v11, %v3841_v16  ;;  %v579_v25 = vsel %vm578_vm5, %v571_v18, -inf  ;;  %v959_v26 = vadd.f32 %v958_v23, %v3841_v16  ;;  %v970_v28 = vsel %vm578_vm5, %v964_v24, -inf }
 0x3e6   :  { %v575_v27 = vsel %vm574_vm6, %v566_v21, -inf  ;;  %v967_v29 = vsel %vm574_vm6, %v959_v26, -inf }
 0x3e9   :  { %v3206_v13 = vpop.f32.mrf.mxu1 }
 0x3ea   :  { %v684_v14 = vadd.f32 %v3206_v13, %v3835_v12 }
 0x3eb   :  { %v678_v17 = vpop.f32.mrf.mxu1 }
 0x3ec   :  { %v679_v19 = vadd.f32 %v678_v17, %v3841_v16  ;;  %v690_v20 = vsel %vm578_vm5, %v684_v14, -inf }
 0x3ed   :  { %691 = vmax.xlane.f32.xlu1 %v690_v20 }
 0x3ee   :  { %v687_v22 = vsel %vm574_vm6, %v679_v19, -inf }
 0x3ef   :  { %688 = vmax.xlane.f32.xlu0 %v687_v22 }
 0x3f1   :  { %580 = vmax.xlane.f32.xlu1 %v579_v25 }
 0x3f3   :  { %576 = vmax.xlane.f32.xlu0 %v575_v27 }
 0x3f5   :  { %971 = vmax.xlane.f32.xlu1 %v970_v28 }
 0x3f7   :  { %968 = vmax.xlane.f32.xlu0 %v967_v29 }
 0x476   :  { %v692_v30 = vpop.xlane.xlu1 %691 }
 0x477   :  { %v694_v31 = vsub.f32 %v684_v14, %v692_v30  ;;  %v989_v30 = vmul.f32 %v3741_v38, %v3788_v62 }
 0x478   :  { %v689_v32 = vpop.xlane.xlu0 %688 }
 0x479   :  { %v697_v33 = vmul.f32 1.442695, %v694_v31  ;;  %v693_v34 = vsub.f32 %v679_v19, %v689_v32 }
 0x47a   :  { %v581_v35 = vpop.xlane.xlu1 %580 }
 0x47b   :  { %3461 = vpow2.f32 %v697_v33  ;;  %v695_v36 = vmul.f32 1.442695, %v693_v34  ;;  %v583_v40 = vsub.f32 %v571_v18, %v581_v35 }
 0x47c   :  { %v577_v41 = vpop.xlane.xlu0 %576 }
 0x47d   :  { %3463 = vpow2.f32 %v695_v36  ;;  %v586_v42 = vmul.f32 1.442695, %v583_v40  ;;  %v582_v43 = vsub.f32 %v566_v21, %v577_v41 }
 0x47e   :  { %v972_v44 = vpop.xlane.xlu1 %971 }
 0x47f   :  { %3465 = vpow2.f32 %v586_v42  ;;  %v584_v45 = vmul.f32 1.442695, %v582_v43  ;;  %v974_v46 = vsub.f32 %v964_v24, %v972_v44  ;;  %v598_v24 = vmul.f32 %v3736_v37, %v3788_v62 }
 0x480   :  { %v969_v47 = vpop.xlane.xlu0 %968  ;;  %v1082_v62 = vmul.f32 %v3797_v0, %v3766_v53 }
 0x481   :  { %3467 = vpow2.f32 %v584_v45  ;;  %v977_v48 = vmul.f32 1.442695, %v974_v46  ;;  %v973_v50 = vsub.f32 %v959_v26, %v969_v47  ;;  %v990_v26 = vmul.f32 %v3741_v38, %v3790_v63 }
 0x482   :  { %v1081_v63 = vmul.f32 %v3797_v0, %v3743_v39 }
 0x483   :  { %3469 = vpow2.f32 %v977_v48  ;;  %v975_v52 = vmul.f32 1.442695, %v973_v50 }
 0x485   :  { %3471 = vpow2.f32 %v975_v52 }
 0x488   :  { %v3462_v54 = vpop.eup %3461 }
 0x489   :  { %v702_v56 = vsel %vm578_vm5, %v3462_v54, 0.0 }
 0x48a   :  { %v3464_v58 = vpop.eup %3463  ;;  %703 = vadd.xlane.f32.xlu1 %v702_v56 }
 0x48b   :  { %v699_v59 = vsel %vm574_vm6, %v3464_v58, 0.0 }
 0x48c   :  { %v3466_v61 = vpop.eup %3465  ;;  %700 = vadd.xlane.f32.xlu0 %v699_v59 }
 0x48d   :  { %v591_v1 = vsel %vm578_vm5, %v3466_v61, 0.0 }
 0x48e   :  { %v3468_v3 = vpop.eup %3467  ;;  %592 = vadd.xlane.f32.xlu1 %v591_v1 }
 0x48f   :  { %v588_v4 = vsel %vm574_vm6, %v3468_v3, 0.0 }
 0x490   :  { %v3470_v5 = vpop.eup %3469  ;;  %589 = vadd.xlane.f32.xlu0 %v588_v4 }
 0x491   :  { %v982_v6 = vsel %vm578_vm5, %v3470_v5, 0.0 }
 0x492   :  { %v3472_v7 = vpop.eup %3471  ;;  %983 = vadd.xlane.f32.xlu1 %v982_v6 }
 0x493   :  { %v979_v8 = vsel %vm574_vm6, %v3472_v7, 0.0 }
 0x494   :  { %980 = vadd.xlane.f32.xlu0 %v979_v8 }
 0x513   :  { %v704_v10 = vpop.xlane.xlu1 %703 }
 0x514   :  { %3473 = vrcp.f32 %v704_v10  ;;  %v3423_v10 = vld [vmem:[%s4285_s1 + $0x38] sm:$0xff]  }
 0x515   :  { %v701_v11 = vpop.xlane.xlu0 %700 }
 0x516   :  { %3475 = vrcp.f32 %v701_v11  ;;  %v3424_v11 = vld [vmem:[%s4285_s1 + $0x30] sm:$0xff]  }
 0x517   :  { %v593_v13 = vpop.xlane.xlu1 %592 }
 0x518   :  { %3477 = vrcp.f32 %v593_v13 }
 0x519   :  { %v590_v14 = vpop.xlane.xlu0 %589 }
 0x51a   :  { %3479 = vrcp.f32 %v590_v14 }
 0x51b   :  { %v984_v15 = vpop.xlane.xlu1 %983 }
 0x51c   :  { %3481 = vrcp.f32 %v984_v15 }
 0x51d   :  { %v981_v17 = vpop.xlane.xlu0 %980 }
 0x51e   :  { %3483 = vrcp.f32 %v981_v17 }
 0x521   :  { %v3474_v18 = vpop.eup %3473 }
 0x522   :  { %v708_v21 = vmul.f32 %v3474_v18, %v3462_v54 }
 0x523   :  { %v3476_v19 = vpop.eup %3475 }
 0x524   :  { %v707_v20 = vmul.f32 %v3476_v19, %v3464_v58  ;;  %v2971_v19 = vld [vmem:[%s4287_s3 + $0x2d] ss:$0 sm:$0xff] }
 0x525   :  { %v3478_v22 = vpop.eup %3477 }
 0x526   :  { %3211 = vmatprep.mubr.msk.f32.mxu1 %vm574_vm6, %v707_v20  ;;  %v597_v27 = vmul.f32 %v3478_v22, %v3466_v61 }
 0x527   :  { %v3480_v23 = vpop.eup %3479  ;;  %3212 = vmatmul.mubr.msk.f32.vlgmr.msra.gmra.mxu1 %vm574_vm6, %v708_v21 }
 0x528   :  { %3215 = vmatpush3.msk.msra.mxu1 %vm717_vm4, %v3828_v9  ;;  %v596_v25 = vmul.f32 %v3480_v23, %v3468_v3 }
 0x529   :  { %3216 = vmatprep.subr.mxu1 %v598_v24  ;;  %v3482_v28 = vpop.eup %3481 }
 0x52a   :  { %3217 = vmatpush3.msra.mxu1 %v598_v24  ;;  %3218 = vmatprep.mubr.msk.f32.mxu1 %vm574_vm6, %v596_v25  ;;  %v988_v31 = vmul.f32 %v3482_v28, %v3470_v5 }
 0x52b   :  { %v3484_v29 = vpop.eup %3483  ;;  %3228 = vmatprep.subr.msk.mxu1 %vm717_vm4, %v990_v26  ;;  %3219 = vmatmul.mubr.msk.f32.vlgmr.msra.gmra.mxu1 %vm574_vm6, %v597_v27 }
 0x52c   :  { %3229 = vmatpush3.msk.msra.mxu1 %vm717_vm4, %v990_v26  ;;  %v987_v9 = vmul.f32 %v3484_v29, %v3472_v7 }
 0x52d   :  { %3230 = vmatprep.subr.mxu1 %v989_v30 }
 0x52e   :  { %3231 = vmatpush3.msra.mxu1 %v989_v30  ;;  %3232 = vmatprep.mubr.msk.f32.mxu1 %vm574_vm6, %v987_v9 }
 0x52f   :  { %3235 = vmatprep.subr.msk.mxu1 %vm178_vm1, %v3754_v49  ;;  %3233 = vmatmul.mubr.msk.f32.vlgmr.msra.gmra.mxu1 %vm574_vm6, %v988_v31 }
 0x530   :  { %3236 = vmatpush3.xpose.msk.msra.mxu1 %vm178_vm1, %v3754_v49  ;;  %3239 = vmatprep.mubr.msk.f32.mxu1 %vm178_vm1, %v1081_v63  ;;  %v3425_v63 = vld [vmem:[%s4286_s2 + $0x8] sm:$0xff]  }
 0x531   :  { %3237 = vmatprep.subr.msk.mxu1 %vm178_vm1, %v3756_v51 }
 0x534   :  { %3238 = vmatpush3.xpose.msk.msra.mxu1 %vm178_vm1, %v3756_v51 }
 0x535   :  { %3249 = vmatprep.subr.bf16.mxu1 %v3583_v2 }
 0x537   :  { %3240 = vmatmul.mubr.msk.f32.vlgmr.msra.gmra.mxu1 %vm178_vm1, %v1082_v62 }
 0x538   :  { %3253 = vmatprep.mubr.msk.bf16.mxu1 %vm3584_vm3, %v3583_v2  ;;  %3250 = vmatpush3.bf16.msra.mxu1 %v3423_v10  ;;  %v3433_v10 = vld [vmem:[%s4285_s1 + $0x48] sm:$0xff]  }
 0x539   :  { %3251 = vmatprep.subr.bf16.mxu1 %v3583_v2 }
 0x53c   :  { %3252 = vmatpush3.bf16.msra.mxu1 %v3424_v11  ;;  %v3434_v11 = vld [vmem:[%s4285_s1 + $0x40] sm:$0xff]  }
 0x53d   :  { %3257 = vmatprep.subr.bf16.mxu1 %v3583_v2 }
 0x5e7   :  { %v3213_v39 = vpop.f32.mrf.mxu1 }
 0x5e9   :  { %v787_v49 = vpop.f32.mrf.mxu1 }
 0x5eb   :  { %v3220_v32 = vpop.f32.mrf.mxu1 }
 0x5ec   :  { %v877_v33 = vadd.f32 %v3220_v32, %v3213_v39 }
 0x5ed   :  { %v871_v34 = vpop.f32.mrf.mxu1 }
 0x5ee   :  { %v872_v35 = vadd.f32 %v871_v34, %v787_v49 }
 0x5ef   :  { %v3234_v36 = vpop.f32.mrf.mxu1 }
 0x5f0   :  { %v1076_v40 = vadd.f32 %v3234_v36, %v877_v33 }
 0x5f1   :  { %v1066_v41 = vpop.f32.mrf.mxu1 }
 0x5f2   :  { %v1075_v51 = vadd.f32 %v1066_v41, %v872_v35 }
 0x5f7   :  { %v3241_v42 = vpop.f32.mrf.mxu1 }
 0x5f8   :  { %v1161_v53 = vadd.f32 %v3241_v42, %v3835_v12 }
 0x5f9   :  { %v1155_v43 = vpop.f32.mrf.mxu1 }
 0x5fa   :  { %v1156_v44 = vadd.f32 %v1155_v43, %v3841_v16  ;;  %v1167_v45 = vsel %vm578_vm5, %v1161_v53, -inf }
 0x5fb   :  { %1168 = vmax.xlane.f32.xlu1 %v1167_v45 }
 0x5fc   :  { %v1164_v46 = vsel %vm574_vm6, %v1156_v44, -inf }
 0x5fd   :  { %1165 = vmax.xlane.f32.xlu0 %v1164_v46 }
 0x684   :  { %v1169_v47 = vpop.xlane.xlu1 %1168 }
 0x685   :  { %v1171_v48 = vsub.f32 %v1161_v53, %v1169_v47  ;;  %v2975_v47 = vld [vmem:[%s4287_s3 + $0x2e] ss:$0 sm:$0xff] }
 0x686   :  { %v1166_v50 = vpop.xlane.xlu0 %1165 }
 0x687   :  { %v1174_v52 = vmul.f32 1.442695, %v1171_v48  ;;  %v1170_v54 = vsub.f32 %v1156_v44, %v1166_v50 }
 0x689   :  { %3485 = vpow2.f32 %v1174_v52  ;;  %v1172_v56 = vmul.f32 1.442695, %v1170_v54 }
 0x68b   :  { %3487 = vpow2.f32 %v1172_v56  ;;  %v2976_v56 = vld [vmem:[%s4287_s3 + $0x2f] ss:$0 sm:$0xff] }
 0x696   :  { %v3486_v58 = vpop.eup %3485 }
 0x697   :  { %v1179_v59 = vsel %vm578_vm5, %v3486_v58, 0.0 }
 0x698   :  { %v3488_v61 = vpop.eup %3487  ;;  %1180 = vadd.xlane.f32.xlu1 %v1179_v59 }
 0x699   :  { %v1176_v1 = vsel %vm574_vm6, %v3488_v61, 0.0 }
 0x69a   :  { %1177 = vadd.xlane.f32.xlu0 %v1176_v1 }
 0x721   :  { %v1181_v3 = vpop.xlane.xlu1 %1180 }
 0x722   :  { %3489 = vrcp.f32 %v1181_v3  ;;  %v3427_v3 = vld [vmem:[%s4285_s1 + $0x78] sm:$0xff]  }
 0x723   :  { %v1178_v4 = vpop.xlane.xlu0 %1177 }
 0x724   :  { %3491 = vrcp.f32 %v1178_v4  ;;  %v3428_v4 = vld [vmem:[%s4285_s1 + $0x70] sm:$0xff]  }
 0x72f   :  { %v3490_v5 = vpop.eup %3489 }
 0x730   :  { %v1185_v8 = vmul.f32 %v3490_v5, %v3486_v58  ;;  %v3429_v5 = vld [vmem:[%s4285_s1 + $0x68] sm:$0xff]  }
 0x731   :  { %v3492_v6 = vpop.eup %3491 }
 0x732   :  { %v1184_v7 = vmul.f32 %v3492_v6, %v3488_v61  ;;  %v3430_v6 = vld [vmem:[%s4285_s1 + $0x60] sm:$0xff]  }
 0x734   :  { %3246 = vmatprep.mubr.msk.f32.mxu0 %vm574_vm6, %v1184_v7  ;;  %v3431_v7 = vld [vmem:[%s4285_s1 + $0x58] sm:$0xff]  }
 0x735   :  { %3247 = vmatmul.mubr.msk.f32.vlgmr.msra.gmra.mxu0 %vm574_vm6, %v1185_v8  ;;  %v3432_v8 = vld [vmem:[%s4285_s1 + $0x50] sm:$0xff]  }
 0x736   :  { %3281 = vmatprep.mubr.msk.bf16.mxu0 %vm3584_vm3, %v3583_v2  ;;  %3266 = vmatpush3.bf16.msra.mxu0 %v3427_v3 }
 0x737   :  { %3267 = vmatprep.subr.bf16.mxu0 %v3583_v2 }
 0x73a   :  { %3268 = vmatpush3.bf16.msra.mxu0 %v3428_v4 }
 0x73b   :  { %3269 = vmatprep.subr.bf16.mxu0 %v3583_v2 }
 0x73e   :  { %3270 = vmatpush3.bf16.msra.mxu0 %v3429_v5 }
 0x73f   :  { %3271 = vmatprep.subr.bf16.mxu0 %v3583_v2 }
 0x742   :  { %3272 = vmatpush3.bf16.msra.mxu0 %v3430_v6 }
 0x743   :  { %3273 = vmatprep.subr.bf16.mxu0 %v3583_v2 }
 0x746   :  { %3274 = vmatpush3.bf16.msra.mxu0 %v3431_v7 }
 0x747   :  { %3275 = vmatprep.subr.bf16.mxu0 %v3583_v2 }
 0x74a   :  { %3276 = vmatpush3.bf16.msra.mxu0 %v3432_v8  ;;  %v2992_v8 = vld [vmem:[%s4287_s3 + $0x32] ss:$0 sm:$0xff] }
 0x74b   :  { %3277 = vmatprep.subr.bf16.mxu0 %v3583_v2 }
 0x74e   :  { %3278 = vmatpush3.bf16.msra.mxu0 %v3433_v10 }
 0x74f   :  { %3279 = vmatprep.subr.bf16.mxu0 %v3583_v2 }
 0x752   :  { %3280 = vmatpush3.bf16.msra.mxu0 %v3434_v11 }
 0x7f5   :  { %v3248_v13 = vpop.f32.mrf.mxu0 }
 0x7f6   :  { %v1273_v15 = vadd.f32 %v3248_v13, %v1076_v40  ;;  %v2977_v13 = vld [vmem:[%s4287_s3 + $0x30] ss:$0 sm:$0xff] }
 0x7f7   :  { %v1263_v14 = vpop.f32.mrf.mxu0 }
 0x7f8   :  { %v1272_v17 = vadd.f32 %v1263_v14, %v1075_v51 }
 0x7fa   :  { %v1274_v18 = vpack.c.bf16 %v1273_v15, %v1272_v17 }
 0x7fc   :  { %3254 = vmatmul.mubr.msk.bf16.vlgmr.msra.gmra.mxu1 %vm178_vm1, %v1274_v18 }
 0x7fd   :  { %3261 = vmatprep.mubr.msk.bf16.mxu1 %vm3584_vm3, %v3583_v2  ;;  %3258 = vmatpush3.bf16.msra.mxu1 %v3425_v63 }
 0x7fe   :  { %3259 = vmatprep.subr.bf16.mxu1 %v3583_v2 }
 0x8bc   :  { %v1329_v20 = vpop.f32.mrf.mxu1 }
 0x8bd   :  { %v1330_v21 = vadd.f32 %v2971_v19, %v1329_v20 }
 0x8be   :  { %v3255_v22 = vpop.f32.mrf.mxu1 }
 0x8bf   :  { %v3918_v23 = vadd.f32 %v1330_v21, %v3675_v55 }
 0x8c0   :  { %v1332_v24 = vpop.f32.mrf.mxu1 }
 0x8c1   :  { %v1333_v25 = vadd.f32 %v2971_v19, %v1332_v24  ;;  %v1340_v26 = vsel %vm178_vm1, %v3918_v23, 0.0  ;;  %v1348_v27 = vmul.f32 %v3918_v23, %v3918_v23 }
 0x8c2   :  { %1341 = vadd.xlane.f32.xlu0 %v1340_v26  ;;  %v3256_v28 = vpop.f32.mrf.mxu1 }
 0x8c3   :  { %v3925_v29 = vadd.f32 %v1333_v25, %v3681_v60  ;;  %v1350_v30 = vsel %vm178_vm1, %v1348_v27, 0.0  ;;  %v3426_v60 = vld [vmem:[%s4286_s2] sm:$0xff]  }
 0x8c4   :  { %3260 = vmatpush3.bf16.msra.mxu1 %v3426_v60 }
 0x8c5   :  { %v1343_v9 = vsel %vm182_vm2, %v3925_v29, 0.0  ;;  %v1349_v55 = vmul.f32 %v3925_v29, %v3925_v29  ;;  %3285 = vmatprep.subr.bf16.mxu1 %v3583_v2 }
 0x8c6   :  { %1351 = vadd.xlane.f32.xlu0 %v1350_v30  ;;  %1344 = vadd.xlane.f32.xlu1 %v1343_v9 }
 0x8c7   :  { %v1353_v31 = vsel %vm182_vm2, %v1349_v55, 0.0 }
 0x8ca   :  { %1354 = vadd.xlane.f32.xlu1 %v1353_v31 }
 0x94b   :  { %v1342_v62 = vpop.xlane.xlu0 %1341 }
 0x94c   :  { %v1346_v39 = vmul.f32 0.03125, %v1342_v62  ;;  %v2983_v62 = vld [vmem:[%s4287_s3 + $0x31] ss:$0 sm:$0xff] }
 0x94e   :  { %v1358_v33 = vmul.f32 %v1346_v39, %v1346_v39  ;;  %v1362_v44 = vsub.f32 %v3918_v23, %v1346_v39 }
 0x94f   :  { %v1352_v49 = vpop.xlane.xlu0 %1351  ;;  %v1345_v32 = vpop.xlane.xlu1 %1344 }
 0x950   :  { %v1356_v34 = vmul.f32 0.03125, %v1352_v49  ;;  %v1347_v35 = vmul.f32 0.03125, %v1345_v32 }
 0x952   :  { %v1360_v36 = vsub.f32 %v1356_v34, %v1358_v33  ;;  %v1359_v51 = vmul.f32 %v1347_v35, %v1347_v35  ;;  %v1363_v48 = vsub.f32 %v3925_v29, %v1347_v35 }
 0x953   :  { %v1355_v40 = vpop.xlane.xlu1 %1354 }
 0x954   :  { %v1364_v41 = vadd.f32 1e-05, %v1360_v36  ;;  %v1357_v42 = vmul.f32 0.03125, %v1355_v40 }
 0x956   :  { %3493 = vrsqrt.f32 %v1364_v41  ;;  %v1361_v53 = vsub.f32 %v1357_v42, %v1359_v51 }
 0x958   :  { %v1365_v43 = vadd.f32 1e-05, %v1361_v53 }
 0x95a   :  { %3495 = vrsqrt.f32 %v1365_v43 }
 0x963   :  { %v3494_v45 = vpop.eup %3493 }
 0x964   :  { %v1368_v46 = vmul.f32 %v3494_v45, %v1362_v44  ;;  %v3435_v44 = vld [vmem:[%s4285_s1 + $0x88] sm:$0xff]  }
 0x966   :  { %v1374_v54 = vmul.f32 %v2975_v47, %v1368_v46 }
 0x967   :  { %v3496_v50 = vpop.eup %3495 }
 0x968   :  { %v1369_v52 = vmul.f32 %v3496_v50, %v1363_v48  ;;  %v1380_v59 = vadd.f32 %v2976_v56, %v1374_v54 }
 0x96a   :  { %v1375_v58 = vmul.f32 %v2975_v47, %v1369_v52 }
 0x96c   :  { %v1381_v61 = vadd.f32 %v2976_v56, %v1375_v58 }
 0x96e   :  { %v1382_v1 = vpack.c.bf16 %v1381_v61, %v1380_v59 }
 0x970   :  { %3262 = vmatmul.mubr.msk.bf16.vlgmr.msra.gmra.mxu1 %vm178_vm1, %v1382_v1 }
 0x971   :  { %3289 = vmatprep.mubr.msk.bf16.mxu1 %vm3584_vm3, %v3583_v2  ;;  %3286 = vmatpush3.bf16.msra.mxu1 %v3435_v44 }
 0x972   :  { %3287 = vmatprep.subr.bf16.mxu1 %v3583_v2 }
 0xa30   :  { %v1437_v14 = vpop.f32.mrf.mxu1 }
 0xa31   :  { %v1438_v15 = vadd.f32 %v2977_v13, %v1437_v14 }
 0xa32   :  { %v3263_v17 = vpop.f32.mrf.mxu1 }
 0xa33   :  { %v2981_v18 = vmul.f32 -1.702, %v1438_v15 }
 0xa34   :  { %v1440_v19 = vpop.f32.mrf.mxu1 }
 0xa35   :  { %v1448_v20 = vmul.f32 1.442695, %v2981_v18  ;;  %v1441_v21 = vadd.f32 %v2977_v13, %v1440_v19 }
 0xa36   :  { %v3264_v22 = vpop.f32.mrf.mxu1 }
 0xa37   :  { %3497 = vpow2.f32 %v1448_v20  ;;  %v2982_v24 = vmul.f32 -1.702, %v1441_v21  ;;  %v3437_v20 = vld [vmem:[%s4285_s1 + $0x98] sm:$0xff]   ;;  %v3438_v22 = vld [vmem:[%s4285_s1 + $0x90] sm:$0xff]  }
 0xa39   :  { %v1450_v25 = vmul.f32 1.442695, %v2982_v24  ;;  %v3439_v24 = vld [vmem:[%s4285_s1 + $0xa8] sm:$0xff]  }
 0xa3b   :  { %3499 = vpow2.f32 %v1450_v25  ;;  %v3440_v25 = vld [vmem:[%s4285_s1 + $0xa0] sm:$0xff]  }
 0xa44   :  { %v3498_v26 = vpop.eup %3497 }
 0xa45   :  { %v1452_v27 = vadd.f32 1.0, %v3498_v26  ;;  %v2994_v26 = vld [vmem:[%s4287_s3 + $0x34] ss:$0 sm:$0xff] }
 0xa47   :  { %3501 = vrcp.f32 %v1452_v27 }
 0xa48   :  { %v3500_v28 = vpop.eup %3499 }
 0xa49   :  { %v1453_v30 = vadd.f32 1.0, %v3500_v28 }
 0xa4b   :  { %3503 = vrcp.f32 %v1453_v30 }
 0xa54   :  { %v3502_v9 = vpop.eup %3501 }
 0xa55   :  { %v1458_v31 = vmul.f32 %v3502_v9, %v1438_v15  ;;  %v2993_v15 = vld [vmem:[%s4287_s3 + $0x33] ss:$0 sm:$0xff] }
 0xa58   :  { %v3504_v55 = vpop.eup %3503 }
 0xa59   :  { %v1459_v63 = vmul.f32 %v3504_v55, %v1441_v21 }
 0xa5b   :  { %v1460_v60 = vpack.c.bf16 %v1459_v63, %v1458_v31 }
 0xa5d   :  { %3282 = vmatmul.mubr.bf16.vlgmr.msra.gmra.mxu0 %v1460_v60 }
 0xb1d   :  { %v1548_v39 = vpop.f32.mrf.mxu0 }
 0xb1e   :  { %v1549_v49 = vadd.f32 %v2983_v62, %v1548_v39  ;;  %v2998_v39 = vld [vmem:[%s4287_s3 + $0x35] ss:$0 sm:$0xff] }
 0xb1f   :  { %v3283_v32 = vpop.f32.mrf.mxu0 }
 0xb20   :  { %v3990_v33 = vadd.f32 %v1549_v49, %v3918_v23 }
 0xb21   :  { %v1551_v34 = vpop.f32.mrf.mxu0 }
 0xb22   :  { %v1552_v35 = vadd.f32 %v2983_v62, %v1551_v34  ;;  %v1595_v36 = vsel %vm178_vm1, %v3990_v33, 0.0  ;;  %v1603_v40 = vmul.f32 %v3990_v33, %v3990_v33 }
 0xb23   :  { %1596 = vadd.xlane.f32.xlu0 %v1595_v36  ;;  %v3284_v41 = vpop.f32.mrf.mxu0 }
 0xb24   :  { %v3997_v51 = vadd.f32 %v1552_v35, %v3925_v29  ;;  %v1605_v42 = vsel %vm178_vm1, %v1603_v40, 0.0  ;;  %v3436_v29 = vld [vmem:[%s4285_s1 + $0x80] sm:$0xff]   ;;  %v3002_v41 = vld [vmem:[%s4287_s3 + $0x36] ss:$0 sm:$0xff] }
 0xb25   :  { %3288 = vmatpush3.bf16.msra.mxu1 %v3436_v29 }
 0xb26   :  { %v1598_v53 = vsel %vm182_vm2, %v3997_v51, 0.0  ;;  %v1604_v23 = vmul.f32 %v3997_v51, %v3997_v51  ;;  %3293 = vmatprep.subr.bf16.mxu1 %v3583_v2 }
 0xb27   :  { %1606 = vadd.xlane.f32.xlu0 %v1605_v42  ;;  %1599 = vadd.xlane.f32.xlu1 %v1598_v53 }
 0xb28   :  { %v1608_v43 = vsel %vm182_vm2, %v1604_v23, 0.0 }
 0xb2b   :  { %1609 = vadd.xlane.f32.xlu1 %v1608_v43 }
 0xbac   :  { %v1597_v45 = vpop.xlane.xlu0 %1596 }
 0xbad   :  { %v1601_v46 = vmul.f32 0.03125, %v1597_v45 }
 0xbaf   :  { %v1613_v50 = vmul.f32 %v1601_v46, %v1601_v46  ;;  %v1617_v5 = vsub.f32 %v3990_v33, %v1601_v46 }
 0xbb0   :  { %v1607_v47 = vpop.xlane.xlu0 %1606  ;;  %v1600_v48 = vpop.xlane.xlu1 %1599 }
 0xbb1   :  { %v1611_v52 = vmul.f32 0.03125, %v1607_v47  ;;  %v1602_v54 = vmul.f32 0.03125, %v1600_v48 }
 0xbb3   :  { %v1615_v56 = vsub.f32 %v1611_v52, %v1613_v50  ;;  %v1614_v61 = vmul.f32 %v1602_v54, %v1602_v54  ;;  %v1618_v10 = vsub.f32 %v3997_v51, %v1602_v54 }
 0xbb4   :  { %v1610_v58 = vpop.xlane.xlu1 %1609 }
 0xbb5   :  { %v1619_v59 = vadd.f32 1e-05, %v1615_v56  ;;  %v1612_v1 = vmul.f32 0.03125, %v1610_v58 }
 0xbb7   :  { %3505 = vrsqrt.f32 %v1619_v59  ;;  %v1616_v3 = vsub.f32 %v1612_v1, %v1614_v61 }
 0xbb9   :  { %v1620_v4 = vadd.f32 1e-05, %v1616_v3 }
 0xbbb   :  { %3507 = vrsqrt.f32 %v1620_v4 }
 0xbc4   :  { %v3506_v6 = vpop.eup %3505 }
 0xbc5   :  { %v1623_v7 = vmul.f32 %v3506_v6, %v1617_v5 }
 0xbc7   :  { %v1629_v14 = vmul.f32 %v2992_v8, %v1623_v7 }
 0xbc8   :  { %v3508_v11 = vpop.eup %3507 }
 0xbc9   :  { %v1624_v13 = vmul.f32 %v3508_v11, %v1618_v10  ;;  %v1635_v18 = vadd.f32 %v2993_v15, %v1629_v14 }
 0xbcb   :  { %v1630_v17 = vmul.f32 %v2992_v8, %v1624_v13 }
 0xbcd   :  { %v1636_v19 = vadd.f32 %v2993_v15, %v1630_v17 }
 0xbcf   :  { %v1637_v21 = vpack.c.bf16 %v1636_v19, %v1635_v18 }
 0xbd1   :  { %3290 = vmatmul.mubr.msk.bf16.vlgmr.msra.gmra.mxu1 %vm178_vm1, %v1637_v21 }
 0xbd2   :  { %3294 = vmatpush3.bf16.msra.mxu1 %v3437_v20  ;;  %3297 = vmatprep.mubr.msk.bf16.mxu1 %vm3584_vm3, %v3583_v2 }
 0xbd3   :  { %3295 = vmatprep.subr.bf16.mxu1 %v3583_v2 }
 0xbd6   :  { %3296 = vmatpush3.bf16.msra.mxu1 %v3438_v22 }
 0xbd7   :  { %3301 = vmatprep.subr.bf16.mxu1 %v3583_v2 }
 0xbd9   :  { %3298 = vmatmul.mubr.msk.bf16.vlgmr.msra.gmra.mxu1 %vm178_vm1, %v1637_v21 }
 0xbda   :  { %3302 = vmatpush3.bf16.msra.mxu1 %v3439_v24  ;;  %3305 = vmatprep.mubr.msk.bf16.mxu1 %vm3584_vm3, %v3583_v2 }
 0xbdb   :  { %3303 = vmatprep.subr.bf16.mxu1 %v3583_v2 }
 0xbde   :  { %3304 = vmatpush3.bf16.msra.mxu1 %v3440_v25 }
 0xbe1   :  { %3306 = vmatmul.mubr.msk.bf16.vlgmr.msra.gmra.mxu1 %vm178_vm1, %v1637_v21 }
 0xc91   :  { %v1692_v27 = vpop.f32.mrf.mxu1 }
 0xc92   :  { %v4046_v28 = vadd.f32 %v2994_v26, %v1692_v27 }
 0xc93   :  { %v3291_v30 = vpop.f32.mrf.mxu1 }
 0xc94   :  { %v1815_v9 = vmul.f32 %v3736_v37, %v4046_v28  ;;  %v2203_v55 = vmul.f32 %v3741_v38, %v4046_v28  ;;  %v1928_v46 = vmul.f32 %v3778_v57, %v4046_v28 }
 0xc95   :  { %v1695_v31 = vpop.f32.mrf.mxu1 }
 0xc96   :  { %3313 = vmatprep.mubr.msk.f32.mxu1 %vm178_vm1, %v1815_v9  ;;  %3341 = vmatprep.mubr.msk.f32.mxu0 %vm178_vm1, %v2203_v55  ;;  %v4069_v40 = vadd.f32 %v2994_v26, %v1695_v31 }
 0xc97   :  { %v3292_v63 = vpop.f32.mrf.mxu1 }
 0xc98   :  { %v1816_v23 = vmul.f32 %v3736_v37, %v4069_v40  ;;  %v2204_v43 = vmul.f32 %v3741_v38, %v4069_v40  ;;  %v1929_v50 = vmul.f32 %v3778_v57, %v4069_v40 }
 0xc99   :  { %v1750_v60 = vpop.f32.mrf.mxu1 }
 0xc9a   :  { %v4059_v35 = vadd.f32 %v2998_v39, %v1750_v60 }
 0xc9b   :  { %v3299_v62 = vpop.f32.mrf.mxu1 }
 0xc9d   :  { %v1753_v49 = vpop.f32.mrf.mxu1 }
 0xc9e   :  { %v4057_v32 = vadd.f32 %v2998_v39, %v1753_v49 }
 0xc9f   :  { %v3300_v34 = vpop.f32.mrf.mxu1 }
 0xca0   :  { %3309 = vmatprep.subr.msk.mxu1 %vm178_vm1, %v4057_v32  ;;  %3337 = vmatprep.subr.msk.mxu0 %vm178_vm1, %v4057_v32 }
 0xca1   :  { %v1808_v36 = vpop.f32.mrf.mxu1  ;;  %3310 = vmatpush3.xpose.msk.msra.mxu1 %vm178_vm1, %v4057_v32  ;;  %3338 = vmatpush3.xpose.msk.msra.mxu0 %vm178_vm1, %v4057_v32 }
 0xca2   :  { %3311 = vmatprep.subr.msk.mxu1 %vm178_vm1, %v4059_v35  ;;  %3339 = vmatprep.subr.msk.mxu0 %vm178_vm1, %v4059_v35  ;;  %v4086_v44 = vadd.f32 %v3002_v41, %v1808_v36 }
 0xca3   :  { %v3307_v42 = vpop.f32.mrf.mxu1 }
 0xca4   :  { %v2501_v38 = vmul.f32 %v3797_v0, %v4086_v44 }
 0xca5   :  { %v1811_v53 = vpop.f32.mrf.mxu1  ;;  %3312 = vmatpush3.xpose.msk.msra.mxu1 %vm178_vm1, %v4059_v35  ;;  %3340 = vmatpush3.xpose.msk.msra.mxu0 %vm178_vm1, %v4059_v35 }
 0xca6   :  { %v4088_v29 = vadd.f32 %v3002_v41, %v1811_v53  ;;  %3316 = vmatprep.subr.msk.mxu1 %vm178_vm1, %v4057_v32 }
 0xca7   :  { %v3308_v45 = vpop.f32.mrf.mxu1 }
 0xca8   :  { %3314 = vmatmul.mubr.msk.f32.vlgmr.msra.gmra.mxu1 %vm178_vm1, %v1816_v23  ;;  %3342 = vmatmul.mubr.msk.f32.vlgmr.msra.gmra.mxu0 %vm178_vm1, %v2204_v43  ;;  %v2502_v47 = vmul.f32 %v3797_v0, %v4088_v29  ;;  %v2034_v48 = vmul.f32 %v3778_v57, %v4088_v29  ;;  %v2033_v0 = vmul.f32 %v3778_v57, %v4086_v44 }
 0xca9   :  { %3317 = vmatpush3.xpose.msk.msra.mxu1 %vm178_vm1, %v4057_v32  ;;  %3320 = vmatprep.mubr.msk.f32.mxu1 %vm178_vm1, %v1928_v46  ;;  %v4121_v52 = vmul.f32 %v3736_v37, %v4088_v29 }
 0xcaa   :  { %3318 = vmatprep.subr.msk.mxu1 %vm178_vm1, %v4059_v35  ;;  %3358 = vmatprep.subr.msk.mxu0 %vm717_vm4, %v2502_v47 }
 0xcab   :  { %3359 = vmatpush3.msk.msra.mxu0 %vm717_vm4, %v2502_v47 }
 0xcac   :  { %3360 = vmatprep.subr.mxu0 %v2501_v38 }
 0xcad   :  { %3319 = vmatpush3.xpose.msk.msra.mxu1 %vm178_vm1, %v4059_v35  ;;  %3361 = vmatpush3.msra.mxu0 %v2501_v38 }
 0xcae   :  { %3323 = vmatprep.subr.msk.mxu1 %vm717_vm4, %v2034_v48  ;;  %3365 = vmatprep.subr.bf16.mxu0 %v3583_v2 }
 0xcb0   :  { %3321 = vmatmul.mubr.msk.f32.vlgmr.msra.gmra.mxu1 %vm178_vm1, %v1929_v50 }
 0xcb1   :  { %3324 = vmatpush3.msk.msra.mxu1 %vm717_vm4, %v2034_v48 }
 0xcb2   :  { %3325 = vmatprep.subr.mxu1 %v2033_v0 }
 0xcb3   :  { %3326 = vmatpush3.msra.mxu1 %v2033_v0 }
 0xcb4   :  { %3330 = vmatprep.subr.msk.mxu1 %vm717_vm4, %v4121_v52 }
 0xd68   :  { %v3315_v54 = vpop.f32.mrf.mxu1  ;;  %v3343_v61 = vpop.f32.mrf.mxu0 }
 0xd69   :  { %v1901_v57 = vadd.f32 %v3315_v54, %v3835_v12  ;;  %v2283_v7 = vadd.f32 %v3343_v61, %v3835_v12 }
 0xd6a   :  { %v1895_v56 = vpop.f32.mrf.mxu1  ;;  %v2277_v6 = vpop.f32.mrf.mxu0 }
 0xd6b   :  { %v1896_v37 = vadd.f32 %v1895_v56, %v3841_v16  ;;  %v1907_v8 = vsel %vm578_vm5, %v1901_v57, -inf  ;;  %v2278_v10 = vadd.f32 %v2277_v6, %v3841_v16  ;;  %v2289_v13 = vsel %vm578_vm5, %v2283_v7, -inf }
 0xd6d   :  { %v1904_v11 = vsel %vm574_vm6, %v1896_v37, -inf  ;;  %v2286_v14 = vsel %vm574_vm6, %v2278_v10, -inf }
 0xd70   :  { %v3322_v58 = vpop.f32.mrf.mxu1 }
 0xd71   :  { %v2008_v59 = vadd.f32 %v3322_v58, %v3835_v12 }
 0xd72   :  { %v2002_v1 = vpop.f32.mrf.mxu1 }
 0xd73   :  { %v2003_v3 = vadd.f32 %v2002_v1, %v3841_v16  ;;  %v2014_v4 = vsel %vm578_vm5, %v2008_v59, -inf }
 0xd74   :  { %2015 = vmax.xlane.f32.xlu1 %v2014_v4 }
 0xd75   :  { %v2011_v5 = vsel %vm574_vm6, %v2003_v3, -inf }
 0xd76   :  { %2012 = vmax.xlane.f32.xlu0 %v2011_v5 }
 0xd78   :  { %1908 = vmax.xlane.f32.xlu1 %v1907_v8 }
 0xd7a   :  { %1905 = vmax.xlane.f32.xlu0 %v1904_v11 }
 0xd7c   :  { %2290 = vmax.xlane.f32.xlu1 %v2289_v13 }
 0xd7e   :  { %2287 = vmax.xlane.f32.xlu0 %v2286_v14 }
 0xdfd   :  { %v2016_v15 = vpop.xlane.xlu1 %2015 }
 0xdfe   :  { %v2018_v17 = vsub.f32 %v2008_v59, %v2016_v15 }
 0xdff   :  { %v2013_v18 = vpop.xlane.xlu0 %2012 }
 0xe00   :  { %v2021_v19 = vmul.f32 1.442695, %v2018_v17  ;;  %v2017_v20 = vsub.f32 %v2003_v3, %v2013_v18 }
 0xe01   :  { %v1909_v12 = vpop.xlane.xlu1 %1908 }
 0xe02   :  { %3509 = vpow2.f32 %v2021_v19  ;;  %v2019_v21 = vmul.f32 1.442695, %v2017_v20  ;;  %v1911_v22 = vsub.f32 %v1901_v57, %v1909_v12  ;;  %v3555_v57 = vld [vmem:[%s4287_s3 + $0x20] ss:$0 sm:$0xff] }
 0xe03   :  { %v1906_v24 = vpop.xlane.xlu0 %1905  ;;  %v1926_v3 = vmul.f32 %v3555_v57, %v4086_v44 }
 0xe04   :  { %3511 = vpow2.f32 %v2019_v21  ;;  %v1914_v16 = vmul.f32 1.442695, %v1911_v22  ;;  %v1910_v25 = vsub.f32 %v1896_v37, %v1906_v24  ;;  %v3556_v37 = vld [vmem:[%s4287_s3 + $0x22] ss:$0 sm:$0xff] }
 0xe05   :  { %v2291_v26 = vpop.xlane.xlu1 %2290  ;;  %v2309_v5 = vmul.f32 %v3556_v37, %v4088_v29  ;;  %v3557_v29 = vld [vmem:[%s4287_s3 + $0x23] ss:$0 sm:$0xff] }
 0xe06   :  { %3513 = vpow2.f32 %v1914_v16  ;;  %v1912_v27 = vmul.f32 1.442695, %v1910_v25  ;;  %v2293_v30 = vsub.f32 %v2283_v7, %v2291_v26  ;;  %v2396_v13 = vmul.f32 %v3557_v29, %v4046_v28  ;;  %v3559_v16 = vld [vmem:[%s4287_s3 + $0x10] sm:$0xff] }
 0xe07   :  { %v2288_v9 = vpop.xlane.xlu0 %2287 }
 0xe08   :  { %3515 = vpow2.f32 %v1912_v27  ;;  %v2296_v55 = vmul.f32 1.442695, %v2293_v30  ;;  %v2292_v31 = vsub.f32 %v2278_v10, %v2288_v9 }
 0xe0a   :  { %3517 = vpow2.f32 %v2296_v55  ;;  %v2294_v63 = vmul.f32 1.442695, %v2292_v31 }
 0xe0c   :  { %3519 = vpow2.f32 %v2294_v63 }
 0xe0f   :  { %v3510_v60 = vpop.eup %3509 }
 0xe10   :  { %v2026_v62 = vsel %vm578_vm5, %v3510_v60, 0.0 }
 0xe11   :  { %v3512_v39 = vpop.eup %3511  ;;  %2027 = vadd.xlane.f32.xlu1 %v2026_v62 }
 0xe12   :  { %v2023_v49 = vsel %vm574_vm6, %v3512_v39, 0.0 }
 0xe13   :  { %v3514_v34 = vpop.eup %3513  ;;  %2024 = vadd.xlane.f32.xlu0 %v2023_v49 }
 0xe14   :  { %v1919_v36 = vsel %vm578_vm5, %v3514_v34, 0.0 }
 0xe15   :  { %v3516_v41 = vpop.eup %3515  ;;  %1920 = vadd.xlane.f32.xlu1 %v1919_v36 }
 0xe16   :  { %v1916_v42 = vsel %vm574_vm6, %v3516_v41, 0.0 }
 0xe17   :  { %v3518_v53 = vpop.eup %3517  ;;  %1917 = vadd.xlane.f32.xlu0 %v1916_v42 }
 0xe18   :  { %v2301_v23 = vsel %vm578_vm5, %v3518_v53, 0.0 }
 0xe19   :  { %v3520_v43 = vpop.eup %3519  ;;  %2302 = vadd.xlane.f32.xlu1 %v2301_v23 }
 0xe1a   :  { %v2298_v45 = vsel %vm574_vm6, %v3520_v43, 0.0 }
 0xe1b   :  { %2299 = vadd.xlane.f32.xlu0 %v2298_v45  ;;  %v3441_v45 = vld [vmem:[%s4285_s1 + $0xb8] sm:$0xff]  }
 0xe9a   :  { %v2028_v46 = vpop.xlane.xlu1 %2027 }
 0xe9b   :  { %3521 = vrcp.f32 %v2028_v46  ;;  %v3442_v46 = vld [vmem:[%s4285_s1 + $0xb0] sm:$0xff]  }
 0xe9c   :  { %v2025_v47 = vpop.xlane.xlu0 %2024 }
 0xe9d   :  { %3523 = vrcp.f32 %v2025_v47 }
 0xe9e   :  { %v1921_v38 = vpop.xlane.xlu1 %1920 }
 0xe9f   :  { %3525 = vrcp.f32 %v1921_v38 }
 0xea0   :  { %v1918_v48 = vpop.xlane.xlu0 %1917 }
 0xea1   :  { %3527 = vrcp.f32 %v1918_v48 }
 0xea2   :  { %v2303_v50 = vpop.xlane.xlu1 %2302 }
 0xea3   :  { %3529 = vrcp.f32 %v2303_v50 }
 0xea4   :  { %v2300_v0 = vpop.xlane.xlu0 %2299 }
 0xea5   :  { %3531 = vrcp.f32 %v2300_v0 }
 0xea8   :  { %v3522_v54 = vpop.eup %3521 }
 0xea9   :  { %v2032_v59 = vmul.f32 %v3522_v54, %v3510_v60  ;;  %v3034_v54 = vld [vmem:[%s4287_s3 + $0x37] ss:$0 sm:$0xff] }
 0xeaa   :  { %v3524_v56 = vpop.eup %3523 }
 0xeab   :  { %v2031_v58 = vmul.f32 %v3524_v56, %v3512_v39 }
 0xeac   :  { %v3526_v61 = vpop.eup %3525 }
 0xead   :  { %3327 = vmatprep.mubr.msk.f32.mxu1 %vm574_vm6, %v2031_v58  ;;  %v1925_v6 = vmul.f32 %v3526_v61, %v3514_v34 }
 0xeae   :  { %v3528_v1 = vpop.eup %3527  ;;  %3328 = vmatmul.mubr.msk.f32.vlgmr.msra.gmra.mxu1 %vm574_vm6, %v2032_v59 }
 0xeaf   :  { %3331 = vmatpush3.msk.msra.mxu1 %vm717_vm4, %v4121_v52  ;;  %v1924_v4 = vmul.f32 %v3528_v1, %v3516_v41  ;;  %v2308_v52 = vmul.f32 %v3556_v37, %v4086_v44  ;;  %v2397_v44 = vmul.f32 %v3557_v29, %v4069_v40  ;;  %v3558_v40 = vld [vmem:[%s4287_s3 + $0x18] sm:$0x3] }
 0xeb0   :  { %3332 = vmatprep.subr.mxu1 %v1926_v3  ;;  %v3530_v7 = vpop.eup %3529 }
 0xeb1   :  { %3333 = vmatpush3.msra.mxu1 %v1926_v3  ;;  %3334 = vmatprep.mubr.msk.f32.mxu1 %vm574_vm6, %v1924_v4  ;;  %v2307_v11 = vmul.f32 %v3530_v7, %v3518_v53 }
 0xeb2   :  { %v3532_v8 = vpop.eup %3531  ;;  %3344 = vmatprep.subr.msk.mxu1 %vm717_vm4, %v2309_v5  ;;  %3335 = vmatmul.mubr.msk.f32.vlgmr.msra.gmra.mxu1 %vm574_vm6, %v1925_v6 }
 0xeb3   :  { %3345 = vmatpush3.msk.msra.mxu1 %vm717_vm4, %v2309_v5  ;;  %v2306_v10 = vmul.f32 %v3532_v8, %v3520_v43 }
 0xeb4   :  { %3346 = vmatprep.subr.mxu1 %v2308_v52 }
 0xeb5   :  { %3347 = vmatpush3.msra.mxu1 %v2308_v52  ;;  %3348 = vmatprep.mubr.msk.f32.mxu1 %vm574_vm6, %v2306_v10  ;;  %v3443_v52 = vld [vmem:[%s4286_s2 + $0x18] sm:$0xff]   ;;  %v3444_v10 = vld [vmem:[%s4286_s2 + $0x10] sm:$0xff]   ;;  %s2902_s2 = sshll.u32 %s3585_s29, 4  ;;  %s2903_s2 = int_to_ptr.vmem [resolvable:$true] %s2902_s2 }
 0xeb6   :  { %3351 = vmatprep.subr.msk.mxu1 %vm178_vm1, %v4057_v32  ;;  %3349 = vmatmul.mubr.msk.f32.vlgmr.msra.gmra.mxu1 %vm574_vm6, %v2307_v11  ;;  %s3560_s30 = scalar_lea.vmem %s2903_s2, 32  ;;  %p3565_p1 = scmp.lt.s32.totalorder %s2903_s2, %s2903_s2 }
 0xeb7   :  { %3352 = vmatpush3.xpose.msk.msra.mxu1 %vm178_vm1, %v4057_v32  ;;  %3355 = vmatprep.mubr.msk.f32.mxu1 %vm178_vm1, %v2396_v13  ;;  %p3561_p0 = scmp.ne.s32.totalorder %s2903_s2, %s3560_s30  ;;  %p3566_p2 = scmp.lt.s32.totalorder %s3560_s30, %s3560_s30 }
 0xeb8   :  { %3353 = vmatprep.subr.msk.mxu1 %vm178_vm1, %v4059_v35 }
 0xeb9   :  { %p3567_p3 = por %p3566_p2, %p3565_p1 }
 0xebb   :  { %3354 = vmatpush3.xpose.msk.msra.mxu1 %vm178_vm1, %v4059_v35  ;;  %p3568_p4 = pnand %p3567_p3, %p3561_p0 }
 0xebc   :  { %3373 = vmatprep.subr.bf16.mxu1 %v3583_v2 }
 0xebe   :  { %3356 = vmatmul.mubr.msk.f32.vlgmr.msra.gmra.mxu1 %vm178_vm1, %v2397_v44 }
 0xebf   :  { %3377 = vmatprep.mubr.msk.bf16.mxu1 %vm3584_vm3, %v3583_v2  ;;  %3374 = vmatpush3.bf16.msra.mxu1 %v3443_v52 }
 0xec0   :  { %3375 = vmatprep.subr.bf16.mxu1 %v3583_v2 }
 0xec3   :  { %3376 = vmatpush3.bf16.msra.mxu1 %v3444_v10 }
 0xf6e   :  { %v3329_v28 = vpop.f32.mrf.mxu1 }
 0xf70   :  { %v2110_v14 = vpop.f32.mrf.mxu1 }
 0xf72   :  { %v3336_v32 = vpop.f32.mrf.mxu1 }
 0xf73   :  { %v2200_v15 = vadd.f32 %v3336_v32, %v3329_v28 }
 0xf74   :  { %v2194_v17 = vpop.f32.mrf.mxu1 }
 0xf75   :  { %v2195_v18 = vadd.f32 %v2194_v17, %v2110_v14 }
 0xf76   :  { %v3350_v19 = vpop.f32.mrf.mxu1 }
 0xf77   :  { %v2395_v20 = vadd.f32 %v3350_v19, %v2200_v15 }
 0xf78   :  { %v2385_v12 = vpop.f32.mrf.mxu1 }
 0xf79   :  { %v2394_v21 = vadd.f32 %v2385_v12, %v2195_v18 }
 0xf7e   :  { %v3357_v35 = vpop.f32.mrf.mxu1 }
 0xf7f   :  { %v2476_v22 = vadd.f32 %v3558_v40, %v3357_v35 }
 0xf80   :  { %v2470_v24 = vpop.f32.mrf.mxu1 }
 0xf81   :  { %v2471_v25 = vadd.f32 %v3559_v16, %v2470_v24  ;;  %v2482_v26 = vsel %vm578_vm5, %v2476_v22, -inf }
 0xf82   :  { %2483 = vmax.xlane.f32.xlu1 %v2482_v26 }
 0xf83   :  { %v2479_v27 = vsel %vm574_vm6, %v2471_v25, -inf }
 0xf84   :  { %2480 = vmax.xlane.f32.xlu0 %v2479_v27  ;;  %v3039_v27 = vld [vmem:[%s4287_s3 + $0x39] ss:$0 sm:$0xff] }
0x100b   :  { %v2484_v30 = vpop.xlane.xlu1 %2483 }
0x100c   :  { %v2486_v9 = vsub.f32 %v2476_v22, %v2484_v30  ;;  %v3038_v22 = vld [vmem:[%s4287_s3 + $0x38] ss:$0 sm:$0xff] }
0x100d   :  { %v2481_v55 = vpop.xlane.xlu0 %2480 }
0x100e   :  { %v2489_v31 = vmul.f32 1.442695, %v2486_v9  ;;  %v2485_v63 = vsub.f32 %v2471_v25, %v2481_v55 }
0x1010   :  { %3533 = vpow2.f32 %v2489_v31  ;;  %v2487_v60 = vmul.f32 1.442695, %v2485_v63  ;;  %v3445_v63 = vld [vmem:[%s4285_s1 + $0xf8] sm:$0xff]  }
0x1012   :  { %3535 = vpow2.f32 %v2487_v60  ;;  %v3446_v60 = vld [vmem:[%s4285_s1 + $0xf0] sm:$0xff]  }
0x101d   :  { %v3534_v62 = vpop.eup %3533 }
0x101e   :  { %v2494_v39 = vsel %vm578_vm5, %v3534_v62, 0.0 }
0x101f   :  { %v3536_v49 = vpop.eup %3535  ;;  %2495 = vadd.xlane.f32.xlu1 %v2494_v39  ;;  %v3448_v39 = vld [vmem:[%s4285_s1 + $0xe0] sm:$0xff]  }
0x1020   :  { %v2491_v34 = vsel %vm574_vm6, %v3536_v49, 0.0 }
0x1021   :  { %2492 = vadd.xlane.f32.xlu0 %v2491_v34  ;;  %v3450_v34 = vld [vmem:[%s4285_s1 + $0xd0] sm:$0xff]  }
0x10a8   :  { %v2496_v36 = vpop.xlane.xlu1 %2495 }
0x10a9   :  { %3537 = vrcp.f32 %v2496_v36  ;;  %v3451_v36 = vld [vmem:[%s4285_s1 + $0xc8] sm:$0xff]  }
0x10aa   :  { %v2493_v41 = vpop.xlane.xlu0 %2492 }
0x10ab   :  { %3539 = vrcp.f32 %v2493_v41  ;;  %v3452_v41 = vld [vmem:[%s4285_s1 + $0xc0] sm:$0xff]  }
0x10b6   :  { %v3538_v42 = vpop.eup %3537 }
0x10b7   :  { %v2500_v43 = vmul.f32 %v3538_v42, %v3534_v62  ;;  %v3447_v62 = vld [vmem:[%s4285_s1 + $0xe8] sm:$0xff]   ;;  %v3040_v42 = vld [vmem:[%s4287_s3 + $0x3a] ss:$0 sm:$0xff] }
0x10b8   :  { %v3540_v53 = vpop.eup %3539 }
0x10b9   :  { %v2499_v23 = vmul.f32 %v3540_v53, %v3536_v49  ;;  %v3449_v49 = vld [vmem:[%s4285_s1 + $0xd8] sm:$0xff]  }
0x10bb   :  { %3362 = vmatprep.mubr.msk.f32.mxu0 %vm574_vm6, %v2499_v23 }
0x10bc   :  { %3363 = vmatmul.mubr.msk.f32.vlgmr.msra.gmra.mxu0 %vm574_vm6, %v2500_v43 }
0x10bd   :  { %3369 = vmatprep.mubr.msk.bf16.mxu0 %vm3584_vm3, %v3583_v2  ;;  %3366 = vmatpush3.bf16.msra.mxu0 %v3441_v45 }
0x10be   :  { %3367 = vmatprep.subr.bf16.mxu0 %v3583_v2 }
0x10c1   :  { %3368 = vmatpush3.bf16.msra.mxu0 %v3442_v46 }
0x10c2   :  { %3381 = vmatprep.subr.bf16.mxu0 %v3583_v2 }
0x117c   :  { %v3364_v47 = vpop.f32.mrf.mxu0 }
0x117d   :  { %v2588_v48 = vadd.f32 %v3364_v47, %v2395_v20 }
0x117e   :  { %v2578_v38 = vpop.f32.mrf.mxu0 }
0x117f   :  { %v2587_v50 = vadd.f32 %v2578_v38, %v2394_v21 }
0x1181   :  { %v2589_v0 = vpack.c.bf16 %v2588_v48, %v2587_v50 }
0x1183   :  { %3370 = vmatmul.mubr.msk.bf16.vlgmr.msra.gmra.mxu0 %vm178_vm1, %v2589_v0 }
0x1184   :  { %3397 = vmatprep.mubr.msk.bf16.mxu0 %vm3584_vm3, %v3583_v2  ;;  %3382 = vmatpush3.bf16.msra.mxu0 %v3445_v63 }
0x1185   :  { %3383 = vmatprep.subr.bf16.mxu0 %v3583_v2 }
0x1188   :  { %3384 = vmatpush3.bf16.msra.mxu0 %v3446_v60 }
0x1189   :  { %3385 = vmatprep.subr.bf16.mxu0 %v3583_v2 }
0x118c   :  { %3386 = vmatpush3.bf16.msra.mxu0 %v3447_v62 }
0x118d   :  { %3387 = vmatprep.subr.bf16.mxu0 %v3583_v2 }
0x1190   :  { %3388 = vmatpush3.bf16.msra.mxu0 %v3448_v39 }
0x1191   :  { %3389 = vmatprep.subr.bf16.mxu0 %v3583_v2 }
0x1194   :  { %3390 = vmatpush3.bf16.msra.mxu0 %v3449_v49 }
0x1195   :  { %3391 = vmatprep.subr.bf16.mxu0 %v3583_v2 }
0x1198   :  { %3392 = vmatpush3.bf16.msra.mxu0 %v3450_v34 }
0x1199   :  { %3393 = vmatprep.subr.bf16.mxu0 %v3583_v2 }
0x119c   :  { %3394 = vmatpush3.bf16.msra.mxu0 %v3451_v36 }
0x119d   :  { %3395 = vmatprep.subr.bf16.mxu0 %v3583_v2 }
0x11a0   :  { %3396 = vmatpush3.bf16.msra.mxu0 %v3452_v41 }
0x1243   :  { %v2644_v56 = vpop.f32.mrf.mxu0 }
0x1244   :  { %v2645_v58 = vadd.f32 %v3034_v54, %v2644_v56 }
0x1245   :  { %v3371_v59 = vpop.f32.mrf.mxu0 }
0x1246   :  { %v4209_v61 = vadd.f32 %v2645_v58, %v3990_v33 }
0x1247   :  { %v2647_v1 = vpop.f32.mrf.mxu0 }
0x1248   :  { %v2648_v57 = vadd.f32 %v3034_v54, %v2647_v1  ;;  %v2655_v3 = vsel %vm178_vm1, %v4209_v61, 0.0  ;;  %v2663_v4 = vmul.f32 %v4209_v61, %v4209_v61 }
0x1249   :  { %2656 = vadd.xlane.f32.xlu0 %v2655_v3  ;;  %v3372_v37 = vpop.f32.mrf.mxu0 }
0x124a   :  { %v2652_v5 = vadd.f32 %v2648_v57, %v3997_v51  ;;  %v2665_v6 = vsel %vm178_vm1, %v2663_v4, 0.0  ;;  %v3046_v37 = vld [vmem:[%s4287_s3 + $0x3b] ss:$0 sm:$0xff] }
0x124c   :  { %v2658_v7 = vsel %vm182_vm2, %v2652_v5, 0.0  ;;  %v2664_v8 = vmul.f32 %v2652_v5, %v2652_v5 }
0x124d   :  { %2666 = vadd.xlane.f32.xlu0 %v2665_v6  ;;  %2659 = vadd.xlane.f32.xlu1 %v2658_v7 }
0x124e   :  { %v2668_v33 = vsel %vm182_vm2, %v2664_v8, 0.0 }
0x1251   :  { %2669 = vadd.xlane.f32.xlu1 %v2668_v33 }
0x12d2   :  { %v2657_v51 = vpop.xlane.xlu0 %2656 }
0x12d3   :  { %v2661_v11 = vmul.f32 0.03125, %v2657_v51 }
0x12d5   :  { %v2673_v44 = vmul.f32 %v2661_v11, %v2661_v11  ;;  %v2677_v21 = vsub.f32 %v4209_v61, %v2661_v11 }
0x12d6   :  { %v2667_v29 = vpop.xlane.xlu0 %2666  ;;  %v2660_v13 = vpop.xlane.xlu1 %2659 }
0x12d7   :  { %v2671_v28 = vmul.f32 0.03125, %v2667_v29  ;;  %v2662_v14 = vmul.f32 0.03125, %v2660_v13 }
0x12d9   :  { %v2675_v32 = vsub.f32 %v2671_v28, %v2673_v44  ;;  %v2674_v18 = vmul.f32 %v2662_v14, %v2662_v14  ;;  %v2678_v24 = vsub.f32 %v2652_v5, %v2662_v14 }
0x12da   :  { %v2670_v15 = vpop.xlane.xlu1 %2669 }
0x12db   :  { %v2679_v17 = vadd.f32 1e-05, %v2675_v32  ;;  %v2672_v19 = vmul.f32 0.03125, %v2670_v15 }
0x12dd   :  { %3541 = vrsqrt.f32 %v2679_v17  ;;  %v2676_v20 = vsub.f32 %v2672_v19, %v2674_v18 }
0x12df   :  { %v2680_v12 = vadd.f32 1e-05, %v2676_v20  ;;  %v3056_v20 = vld [vmem:[%s4287_s3 + $0x1d] ss:$0 sm:$0xff] }
0x12e1   :  { %3543 = vrsqrt.f32 %v2680_v12 }
0x12ea   :  { %v3542_v35 = vpop.eup %3541 }
0x12eb   :  { %v2683_v40 = vmul.f32 %v3542_v35, %v2677_v21 }
0x12ed   :  { %v2689_v26 = vmul.f32 %v3038_v22, %v2683_v40 }
0x12ee   :  { %v3544_v16 = vpop.eup %3543 }
0x12ef   :  { %v2684_v25 = vmul.f32 %v3544_v16, %v2678_v24  ;;  %v2695_v9 = vadd.f32 %v3039_v27, %v2689_v26 }
0x12f1   :  { %v2690_v30 = vmul.f32 %v3038_v22, %v2684_v25 }
0x12f3   :  { %v2696_v55 = vadd.f32 %v3039_v27, %v2690_v30 }
0x12f5   :  { %v2697_v31 = vpack.c.bf16 %v2696_v55, %v2695_v9 }
0x12f7   :  { %3378 = vmatmul.mubr.msk.bf16.vlgmr.msra.gmra.mxu1 %vm178_vm1, %v2697_v31 }
0x13b7   :  { %v2752_v53 = vpop.f32.mrf.mxu1 }
0x13b8   :  { %v2753_v23 = vadd.f32 %v3040_v42, %v2752_v53 }
0x13b9   :  { %v3379_v43 = vpop.f32.mrf.mxu1 }
0x13ba   :  { %v3044_v45 = vmul.f32 -1.702, %v2753_v23 }
0x13bb   :  { %v2755_v46 = vpop.f32.mrf.mxu1 }
0x13bc   :  { %v2763_v47 = vmul.f32 1.442695, %v3044_v45  ;;  %v2756_v38 = vadd.f32 %v3040_v42, %v2755_v46 }
0x13bd   :  { %v3380_v48 = vpop.f32.mrf.mxu1 }
0x13be   :  { %3545 = vpow2.f32 %v2763_v47  ;;  %v3045_v50 = vmul.f32 -1.702, %v2756_v38 }
0x13c0   :  { %v2765_v2 = vmul.f32 1.442695, %v3045_v50 }
0x13c2   :  { %3547 = vpow2.f32 %v2765_v2 }
0x13cb   :  { %v3546_v0 = vpop.eup %3545 }
0x13cc   :  { %v2767_v54 = vadd.f32 1.0, %v3546_v0 }
0x13ce   :  { %3549 = vrcp.f32 %v2767_v54 }
0x13cf   :  { %v3548_v56 = vpop.eup %3547 }
0x13d0   :  { %v2768_v58 = vadd.f32 1.0, %v3548_v56 }
0x13d2   :  { %3551 = vrcp.f32 %v2768_v58 }
0x13db   :  { %v3550_v59 = vpop.eup %3549 }
0x13dc   :  { %v2773_v57 = vmul.f32 %v3550_v59, %v2753_v23 }
0x13df   :  { %v3552_v1 = vpop.eup %3551 }
0x13e0   :  { %v2774_v3 = vmul.f32 %v3552_v1, %v2756_v38 }
0x13e2   :  { %v2775_v4 = vpack.c.bf16 %v2774_v3, %v2773_v57 }
0x13e4   :  { %3398 = vmatmul.mubr.bf16.vlgmr.msra.gmra.mxu0 %v2775_v4 }
0x14a4   :  { %v2863_v5 = vpop.f32.mrf.mxu0 }
0x14a5   :  { %v2864_v6 = vadd.f32 %v3046_v37, %v2863_v5 }
0x14a6   :  { %v3399_v7 = vpop.f32.mrf.mxu0 }
0x14a7   :  { %v2869_v8 = vadd.f32 %v2864_v6, %v4209_v61  ;;  %v3055_v61 = vld [vmem:[%s4287_s3 + $0x1c] ss:$0 sm:$0xff] }
0x14a8   :  { %v2866_v33 = vpop.f32.mrf.mxu0 }
0x14a9   :  { %v2870_v52 = vsel %vm182_vm2, %v2869_v8, 0.0  ;;  %v2874_v10 = vmul.f32 %v2869_v8, %v2869_v8 }
0x14aa   :  { %2871 = vadd.xlane.f32.xlu0 %v2870_v52  ;;  %v3400_v51 = vpop.f32.mrf.mxu0 }
0x14ab   :  { %v2875_v11 = vsel %vm182_vm2, %v2874_v10, 0.0 }
0x14ac   :  { %2876 = vadd.xlane.f32.xlu1 %v2875_v11 }
0x1533   :  { %v2872_v29 = vpop.xlane.xlu0 %2871 }
0x1534   :  { %v2873_v13 = vmul.f32 0.03125, %v2872_v29 }
0x1535   :  { %v2877_v44 = vpop.xlane.xlu1 %2876 }
0x1536   :  { %v2879_v28 = vmul.f32 %v2873_v13, %v2873_v13  ;;  %v2878_v14 = vmul.f32 0.03125, %v2877_v44  ;;  %v2881_v17 = vsub.f32 %v2869_v8, %v2873_v13 }
0x1538   :  { %v2880_v32 = vsub.f32 %v2878_v14, %v2879_v28 }
0x153a   :  { %v2882_v15 = vadd.f32 1e-05, %v2880_v32 }
0x153c   :  { %3553 = vrsqrt.f32 %v2882_v15 }
0x1549   :  { %v3554_v18 = vpop.eup %3553 }
0x154a   :  { %v2884_v19 = vmul.f32 %v3554_v18, %v2881_v17 }
0x154c   :  { %v2889_v12 = vmul.f32 %v3055_v61, %v2884_v19 }
0x154e   :  { %v2894_v21 = vadd.f32 %v3056_v20, %v2889_v12 }
0x1550   :  { %2895 = vst.msk [vmem:[#allocation2] sm:$0x3] %vm182_vm2, %v2894_v21 }
0x1551   :  { %3571 = shalt.err (!%p3568_p4)
}
0x1552   :  { %2905 = dma.vmem_to_hbm [thread:$0]  %s2903_s2, 32, %s4288_s4, [#allocation3]  }
0x1553   :  { %3580 = dma.done.wait [#allocation3], 32  }
0x1554   :  { %3581 = vsyncadd [#allocation3], 4294967264 }
0x1555   :  { %2909 = vsyncpa [#allocation3], 1 }

</bundles_post_ra>
